<compile_context>
chip_gen: v7x
topology: tpu7x:2x2x1
jax: 0.10.0
libtpu: 0.0.40
codegen_flags: <defaults>
</compile_context>

<pallas_src>
import math
import numpy as np
import jax
import jax.numpy as jnp
from jax.experimental import pallas as pl
from jax.experimental.pallas import tpu as pltpu  # noqa: F401  (TPU backend)

# ----- hyper-parameters (small shapes consistent with the module) ------------
B           = 2
N_CHANS     = 4       # n_chans
N_TIMES     = 64      # n_times
N_FILTERS   = 8       # n_filters_time == emb size
FILT_T      = 5       # filter_time_length
POOL_LEN    = 8       # pool_time_length
POOL_STRIDE = 4       # pool_time_stride
ATT_DEPTH   = 2
ATT_HEADS   = 2
FF_EXPAND   = 4
FC_OUT      = 64      # _FullyConnected out_channels (scaled down from 256)
FC_HID      = 32      # hidden_channels
N_CLASSES   = 3       # n_outputs
EPS_BN      = 1e-5
EPS_LN      = 1e-5

T_CONV = N_TIMES - FILT_T + 1                     # width after temporal conv
SEQ    = (T_CONV - POOL_LEN) // POOL_STRIDE + 1   # tokens after avg-pool
FC_IN  = SEQ * N_FILTERS                          # final_fc_length ('auto')
HEAD_D = N_FILTERS // ATT_HEADS
E      = N_FILTERS
F4     = FF_EXPAND * N_FILTERS

# packed-operand column offsets ------------------------------------------------
CK          = FILT_T * N_CHANS        # im2col rows (k*C + c)
W_CONV_END  = CK + 1                  # + folded-bias column
W_PT_END    = W_CONV_END + E          # wp^T
W_REP_END   = W_PT_END + FC_IN        # lane-replication matrix for the flatten

V_LN1G, V_LN1B = 0, E
V_BQKV  = 2 * E
V_BO    = V_BQKV + 3 * E
V_LN2G  = V_BO + E
V_LN2B  = V_LN2G + E
V_B1    = V_LN2B + E
V_B2    = V_B1 + F4
V_LEN   = V_B2 + E                    # 104

M_BP  = 0
M_HB1 = M_BP + E
M_HB2 = M_HB1 + FC_OUT
M_HB3 = M_HB2 + FC_HID
M_LEN = M_HB3 + N_CLASSES             # 107

# TODO(synk): nn.Dropout train-mode RNG masking has no clean inference
# equivalent here; dropout layers are identities (eval semantics).


# ----------------------------- activations ----------------------------------
def _elu(x):
    return jnp.where(x > 0, x, jnp.exp(jnp.minimum(x, 0.0)) - 1.0)


def _gelu(x):
    # exact (erf-based) GELU, matching nn.GELU default
    return 0.5 * x * (1.0 + jax.lax.erf(x * (1.0 / math.sqrt(2.0))))


# ----------------------------- fused Pallas kernel ---------------------------
def _conformer_kernel(x_ref, wmisc_ref, pool_ref, amask_ref, tmat_ref, tvec_ref,
                      fcmask_ref, selb_ref, hw1_ref, hw2_ref, hw3_ref, mvec_ref,
                      out_ref):
    f32 = jnp.float32
    wmisc = wmisc_ref[...]
    wconv = wmisc[:, :W_CONV_END]            # (E, CK+1) temporal∘spatial conv + BN + bias col
    wpt   = wmisc[:, W_CONV_END:W_PT_END]    # (E, E)    1x1 projection conv (transposed)
    rep   = wmisc[:, W_PT_END:W_REP_END]     # (E, FC_IN) identity tiled SEQ times
    mvec  = mvec_ref[...]                    # (1, M_LEN) misc biases

    # ---- patch embedding: both batch items side-by-side along the lane axis -
    cols = []
    for b in range(B):
        xb = x_ref[b]                                                     # (C, T)
        cols.append(jnp.concatenate(
            [xb[:, k:k + T_CONV] for k in range(FILT_T)], axis=0))        # (CK, T_CONV)
    col = jnp.concatenate(cols, axis=1)                                   # (CK, B*T_CONV)
    col = jnp.concatenate([col, jnp.ones((1, B * T_CONV), f32)], axis=0)  # bias row
    z = jnp.dot(wconv, col, preferred_element_type=f32)                   # (E, B*T_CONV)
    a = _elu(z)
    pooled = jnp.dot(a, pool_ref[...], preferred_element_type=f32)        # (E, B*SEQ)
    h = (jnp.dot(pooled.T, wpt, preferred_element_type=f32)
         + mvec[:, M_BP:M_HB1])                                           # (B*SEQ, E)

    # ---- transformer encoder: batch handled via block-diagonal mask ---------
    amask = amask_ref[...]                    # (B*SEQ, B*SEQ), 0 / -1e9
    scale = 1.0 / math.sqrt(E)                # emb_size ** 0.5 (as in the module)
    for l in range(ATT_DEPTH):
        mat = tmat_ref[l]                     # (E, 96)  [wq|wk|wv|wo|w1|w2^T]
        vec = tvec_ref[l]                     # (1, 104) packed small vectors
        wqkv = mat[:, :3 * E]
        wo   = mat[:, 3 * E:4 * E]
        w1   = mat[:, 4 * E:4 * E + F4]
        w2t  = mat[:, 4 * E + F4:4 * E + 2 * F4]

        mu = jnp.mean(h, axis=-1, keepdims=True)
        var = jnp.mean((h - mu) ** 2, axis=-1, keepdims=True)
        xn = ((h - mu) * jax.lax.rsqrt(var + EPS_LN) * vec[:, V_LN1G:V_LN1G + E]
              + vec[:, V_LN1B:V_LN1B + E])

        qkv = (jnp.dot(xn, wqkv, preferred_element_type=f32)
               + vec[:, V_BQKV:V_BQKV + 3 * E])                            # (B*S, 3E)
        attn = None
        for hh in range(ATT_HEADS):
            c0 = hh * HEAD_D
            qh = qkv[:, c0:c0 + HEAD_D]
            kh = qkv[:, E + c0:E + c0 + HEAD_D]
            vh = qkv[:, 2 * E + c0:2 * E + c0 + HEAD_D]
            e = (jax.lax.dot_general(qh, kh, (((1,), (1,)), ((), ())),
                                     preferred_element_type=f32) * scale
                 + amask)                                                   # (B*S, B*S)
            e = e - jnp.max(e, axis=-1, keepdims=True)
            p = jnp.exp(e)
            p = p * pl.reciprocal(jnp.sum(p, axis=-1, keepdims=True), approx=True)
            ov = jnp.dot(p, vh, preferred_element_type=f32)                 # (B*S, D)
            # head-concat folded into the output projection (wo split by head)
            oh = jnp.dot(ov, wo[c0:c0 + HEAD_D, :], preferred_element_type=f32)
            attn = oh if attn is None else attn + oh
        h = h + attn + vec[:, V_BO:V_BO + E]                                # residual

        mu2 = jnp.mean(h, axis=-1, keepdims=True)
        var2 = jnp.mean((h - mu2) ** 2, axis=-1, keepdims=True)
        xn2 = ((h - mu2) * jax.lax.rsqrt(var2 + EPS_LN) * vec[:, V_LN2G:V_LN2G + E]
               + vec[:, V_LN2B:V_LN2B + E])
        ff = jnp.dot(xn2, w1, preferred_element_type=f32) + vec[:, V_B1:V_B1 + F4]
        ff = _gelu(ff)
        ff = (jax.lax.dot_general(ff, w2t, (((1,), (1,)), ((), ())),
                                  preferred_element_type=f32)
              + vec[:, V_B2:V_B2 + E])
        h = h + ff                                                          # residual

    # ---- classification head: flatten via replication + mask + selection ----
    # hexp[r, s*E+g] = h[r, g] * [r % SEQ == s];  flat[b, s*E+g] = h[b*SEQ+s, g]
    hexp = jnp.dot(h, rep, preferred_element_type=f32) * fcmask_ref[...]    # (B*S, FC_IN)
    flat = jnp.dot(selb_ref[...], hexp, preferred_element_type=f32)         # (B, FC_IN)
    o1 = _elu(jnp.dot(flat, hw1_ref[...], preferred_element_type=f32)
              + mvec[:, M_HB1:M_HB2])
    o2 = _elu(jnp.dot(o1, hw2_ref[...], preferred_element_type=f32)
              + mvec[:, M_HB2:M_HB3])
    out_ref[...] = (jnp.dot(o2, hw3_ref[...], preferred_element_type=f32)
                    + mvec[:, M_HB3:M_LEN])                                  # (B, n_classes)


# ----------------------------- wrapper ---------------------------------------
@jax.jit
def conformer_forward(x, kp):
    return pl.pallas_call(
        _conformer_kernel,
        out_shape=jax.ShapeDtypeStruct((B, N_CLASSES), jnp.float32),
    )(x, kp['wmisc'], kp['pool_bd'], kp['amask'], kp['tmat'], kp['tvec'],
      kp['fc_mask'], kp['selb'], kp['hw1'], kp['hw2'], kp['hw3'], kp['mvec'])


# ----------------------------- parameters ------------------------------------
def init_params(key):
    keys = iter(jax.random.split(key, 64))

    def nrm(shape, scale=0.1):
        return (scale * jax.random.normal(next(keys), shape)).astype(jnp.float32)

    # BatchNorm2d running stats folded into scale / shift (eval semantics)
    gamma = 1.0 + nrm((N_FILTERS, 1))
    beta = nrm((N_FILTERS, 1))
    rmean = nrm((N_FILTERS, 1))
    rvar = 1.0 + jnp.abs(nrm((N_FILTERS, 1)))
    bn_scale = gamma / jnp.sqrt(rvar + EPS_BN)
    bn_shift = beta - rmean * bn_scale

    # AvgPool2d((1, POOL_LEN), stride (1, POOL_STRIDE)) as a (T_CONV, SEQ) matrix
    pool = jnp.zeros((T_CONV, SEQ), jnp.float32)
    for s in range(SEQ):
        pool = pool.at[s * POOL_STRIDE:s * POOL_STRIDE + POOL_LEN, s].set(1.0 / POOL_LEN)

    patch = dict(
        wt=nrm((N_FILTERS, FILT_T)), bt=nrm((N_FILTERS, 1)),
        ws=nrm((N_CHANS, N_FILTERS, N_FILTERS)), bs=nrm((N_FILTERS, 1)),
        bn_scale=bn_scale, bn_shift=bn_shift, pool=pool,
        wp=nrm((N_FILTERS, N_FILTERS)), bp=nrm((N_FILTERS, 1)))

    layers = []
    for _ in range(ATT_DEPTH):
        layers.append(dict(
            ln1_g=1.0 + nrm((1, E)), ln1_b=nrm((1, E)),
            wq=nrm((E, E)), bq=nrm((1, E)),
            wk=nrm((E, E)), bk=nrm((1, E)),
            wv=nrm((E, E)), bv=nrm((1, E)),
            wo=nrm((E, E)), bo=nrm((1, E)),
            ln2_g=1.0 + nrm((1, E)), ln2_b=nrm((1, E)),
            w1=nrm((E, F4)), b1=nrm((1, F4)),
            w2=nrm((F4, E)), b2=nrm((1, E))))

    head_p = dict(
        w1=nrm((FC_IN, FC_OUT)), b1=nrm((1, FC_OUT)),
        w2=nrm((FC_OUT, FC_HID)), b2=nrm((1, FC_HID)),
        w3=nrm((FC_HID, N_CLASSES)), b3=nrm((1, N_CLASSES)))

    return dict(patch=patch, layers=layers, head=head_p)


def pack_params(p):
    """Fold / stack raw parameters into the 11 packed kernel operands."""
    pe = p['patch']
    # fold: spatial_conv( temporal_conv(x) ) + BN  ->  one (E, CK) matmul
    w_eff = jnp.einsum('cgf,fk->gkc', pe['ws'], pe['wt'],
                       precision='highest').reshape(N_FILTERS, CK)
    b_eff = pe['bs'][:, 0] + jnp.einsum('cgf,f->g', pe['ws'], pe['bt'][:, 0],
                                        precision='highest')
    w_conv = pe['bn_scale'] * w_eff                                         # (E, CK)
    b_conv = (pe['bn_scale'][:, 0] * b_eff + pe['bn_shift'][:, 0])[:, None]  # (E, 1)
    # lane-replication matrix for the head flatten: rep[g, s*E+g] = 1
    rep = jnp.asarray(np.tile(np.eye(N_FILTERS, dtype=np.float32), (1, SEQ)))
    wmisc = jnp.concatenate([w_conv, b_conv, pe['wp'].T, rep], axis=1)      # (E, 141)

    # block-diagonal pooling matrix (B*T_CONV, B*SEQ)
    pool_np = np.asarray(pe['pool'])
    pool_bd = np.zeros((B * T_CONV, B * SEQ), np.float32)
    for b in range(B):
        pool_bd[b * T_CONV:(b + 1) * T_CONV, b * SEQ:(b + 1) * SEQ] = pool_np

    # block-diagonal additive attention mask (keeps batches independent)
    amask = np.full((B * SEQ, B * SEQ), -1e9, np.float32)
    for b in range(B):
        amask[b * SEQ:(b + 1) * SEQ, b * SEQ:(b + 1) * SEQ] = 0.0

    tmat = jnp.stack([jnp.concatenate(
        [lp['wq'], lp['wk'], lp['wv'], lp['wo'], lp['w1'], lp['w2'].T], axis=1)
        for lp in p['layers']])                                             # (L, E, 96)
    tvec = jnp.stack([jnp.concatenate(
        [lp['ln1_g'], lp['ln1_b'], lp['bq'], lp['bk'], lp['bv'], lp['bo'],
         lp['ln2_g'], lp['ln2_b'], lp['b1'], lp['b2']], axis=1)
        for lp in p['layers']])                                             # (L, 1, 104)

    # flatten mask and batch-selection matrices for the FC head
    fc_mask = np.zeros((B * SEQ, FC_IN), np.float32)
    for r in range(B * SEQ):
        s = r % SEQ
        fc_mask[r, s * N_FILTERS:(s + 1) * N_FILTERS] = 1.0
    selb = np.zeros((B, B * SEQ), np.float32)
    for b in range(B):
        selb[b, b * SEQ:(b + 1) * SEQ] = 1.0

    hp = p['head']
    mvec = jnp.concatenate([pe['bp'].T, hp['b1'], hp['b2'], hp['b3']], axis=1)  # (1, 107)

    return dict(wmisc=wmisc, pool_bd=jnp.asarray(pool_bd), amask=jnp.asarray(amask),
                tmat=tmat, tvec=tvec, fc_mask=jnp.asarray(fc_mask),
                selb=jnp.asarray(selb), hw1=hp['w1'], hw2=hp['w2'], hw3=hp['w3'],
                mvec=mvec)


# ----------------------------- pure-JAX reference ----------------------------
def ref_forward(x, params):
    pe = params['patch']
    acc = jnp.zeros((B, N_FILTERS, N_CHANS, T_CONV), jnp.float32)
    for k in range(FILT_T):
        acc = acc + pe['wt'][None, :, None, k:k + 1] * x[:, None, :, k:k + T_CONV]
    acc = acc + pe['bt'][None, :, :, None]
    y = jnp.einsum('cgf,bfct->bgt', pe['ws'], acc) + pe['bs'][None]
    y = y * pe['bn_scale'][None] + pe['bn_shift'][None]
    y = _elu(y)
    pooled = jnp.einsum('bft,ts->bfs', y, pe['pool'])
    proj = jnp.einsum('gf,bfs->bgs', pe['wp'], pooled) + pe['bp'][None]
    tok = jnp.transpose(proj, (0, 2, 1))            # (B, SEQ, E)

    for lp in params['layers']:
        mu = tok.mean(-1, keepdims=True)
        var = ((tok - mu) ** 2).mean(-1, keepdims=True)
        xn = (tok - mu) * jax.lax.rsqrt(var + EPS_LN) * lp['ln1_g'] + lp['ln1_b']
        q = xn @ lp['wq'] + lp['bq']
        k_ = xn @ lp['wk'] + lp['bk']
        v = xn @ lp['wv'] + lp['bv']
        qh = q.reshape(B, SEQ, ATT_HEADS, HEAD_D).transpose(0, 2, 1, 3)
        kh = k_.reshape(B, SEQ, ATT_HEADS, HEAD_D).transpose(0, 2, 1, 3)
        vh = v.reshape(B, SEQ, ATT_HEADS, HEAD_D).transpose(0, 2, 1, 3)
        e = jnp.einsum('bhqd,bhkd->bhqk', qh, kh) / math.sqrt(N_FILTERS)
        att = jax.nn.softmax(e, axis=-1)
        o = jnp.einsum('bhqk,bhkd->bhqd', att, vh)
        o = o.transpose(0, 2, 1, 3).reshape(B, SEQ, N_FILTERS)
        o = o @ lp['wo'] + lp['bo']
        x1 = tok + o
        mu2 = x1.mean(-1, keepdims=True)
        var2 = ((x1 - mu2) ** 2).mean(-1, keepdims=True)
        xn2 = (x1 - mu2) * jax.lax.rsqrt(var2 + EPS_LN) * lp['ln2_g'] + lp['ln2_b']
        h = _gelu(xn2 @ lp['w1'] + lp['b1'])
        tok = x1 + (h @ lp['w2'] + lp['b2'])

    hp = params['head']
    xf = tok.reshape(B, FC_IN)
    h = _elu(xf @ hp['w1'] + hp['b1'])
    h = _elu(h @ hp['w2'] + hp['b2'])
    return h @ hp['w3'] + hp['b3']


# ----------------------------- main -------------------------------------------
if __name__ == "__main__":
    key = jax.random.PRNGKey(0)
    kx, kp = jax.random.split(key)
    x = jax.random.normal(kx, (B, N_CHANS, N_TIMES), dtype=jnp.float32)
    params = init_params(kp)
    packed = pack_params(params)

    out = jax.block_until_ready(conformer_forward(x, packed))
    assert out.shape == (B, N_CLASSES), out.shape

    ref = ref_forward(x, params)
    # tolerance absorbs the EUP approx-reciprocal used for softmax normalisation
    assert bool(jnp.allclose(out, ref, atol=5e-3, rtol=5e-3)), (out, ref)

    print("KERNEL_OK")
</pallas_src>

<mosaic_0001>
module attributes {stable_mosaic.version = 11 : i64} {
  func.func @_conformer_kernel(%arg0: memref<2x4x64xf32, #tpu.memory_space<vmem>>, %arg1: memref<8x141xf32, #tpu.memory_space<vmem>>, %arg2: memref<120x28xf32, #tpu.memory_space<vmem>>, %arg3: memref<28x28xf32, #tpu.memory_space<vmem>>, %arg4: memref<2x8x96xf32, #tpu.memory_space<vmem>>, %arg5: memref<2x1x104xf32, #tpu.memory_space<vmem>>, %arg6: memref<28x112xf32, #tpu.memory_space<vmem>>, %arg7: memref<2x28xf32, #tpu.memory_space<vmem>>, %arg8: memref<112x64xf32, #tpu.memory_space<vmem>>, %arg9: memref<64x32xf32, #tpu.memory_space<vmem>>, %arg10: memref<32x3xf32, #tpu.memory_space<vmem>>, %arg11: memref<1x107xf32, #tpu.memory_space<vmem>>, %arg12: memref<2x3xf32, #tpu.memory_space<vmem>>) attributes {dimension_semantics = [], scalar_prefetch = 0 : i64, scratch_operands = 0 : i64, tpu.core_type = #tpu.core_type<tc>} {
    %c0 = arith.constant 0 : index
    %c0_0 = arith.constant 0 : index
    %0 = vector.load %arg1[%c0, %c0_0] : memref<8x141xf32, #tpu.memory_space<vmem>>, vector<8x141xf32>
    %1 = vector.extract_strided_slice %0 {offsets = [0, 0], sizes = [8, 21], strides = [1, 1]} : vector<8x141xf32> to vector<8x21xf32>
    %2 = vector.extract_strided_slice %0 {offsets = [0, 21], sizes = [8, 8], strides = [1, 1]} : vector<8x141xf32> to vector<8x8xf32>
    %3 = vector.extract_strided_slice %0 {offsets = [0, 29], sizes = [8, 112], strides = [1, 1]} : vector<8x141xf32> to vector<8x112xf32>
    %c0_1 = arith.constant 0 : index
    %c0_2 = arith.constant 0 : index
    %4 = vector.load %arg11[%c0_1, %c0_2] : memref<1x107xf32, #tpu.memory_space<vmem>>, vector<1x107xf32>
    %c0_3 = arith.constant 0 : index
    %c0_4 = arith.constant 0 : index
    %c0_5 = arith.constant 0 : index
    %5 = vector.load %arg0[%c0_3, %c0_4, %c0_5] : memref<2x4x64xf32, #tpu.memory_space<vmem>>, vector<1x4x64xf32>
    %6 = vector.shape_cast %5 : vector<1x4x64xf32> to vector<4x64xf32>
    %7 = vector.extract_strided_slice %6 {offsets = [0, 0], sizes = [4, 60], strides = [1, 1]} : vector<4x64xf32> to vector<4x60xf32>
    %8 = vector.extract_strided_slice %6 {offsets = [0, 1], sizes = [4, 60], strides = [1, 1]} : vector<4x64xf32> to vector<4x60xf32>
    %9 = vector.extract_strided_slice %6 {offsets = [0, 2], sizes = [4, 60], strides = [1, 1]} : vector<4x64xf32> to vector<4x60xf32>
    %10 = vector.extract_strided_slice %6 {offsets = [0, 3], sizes = [4, 60], strides = [1, 1]} : vector<4x64xf32> to vector<4x60xf32>
    %11 = vector.extract_strided_slice %6 {offsets = [0, 4], sizes = [4, 60], strides = [1, 1]} : vector<4x64xf32> to vector<4x60xf32>
    %12 = tpu.concatenate %7, %8, %9, %10, %11 in 0 : vector<4x60xf32>, vector<4x60xf32>, vector<4x60xf32>, vector<4x60xf32>, vector<4x60xf32> -> vector<20x60xf32>
    %c1 = arith.constant 1 : index
    %c0_6 = arith.constant 0 : index
    %c0_7 = arith.constant 0 : index
    %13 = vector.load %arg0[%c1, %c0_6, %c0_7] : memref<2x4x64xf32, #tpu.memory_space<vmem>>, vector<1x4x64xf32>
    %14 = vector.shape_cast %13 : vector<1x4x64xf32> to vector<4x64xf32>
    %15 = vector.extract_strided_slice %14 {offsets = [0, 0], sizes = [4, 60], strides = [1, 1]} : vector<4x64xf32> to vector<4x60xf32>
    %16 = vector.extract_strided_slice %14 {offsets = [0, 1], sizes = [4, 60], strides = [1, 1]} : vector<4x64xf32> to vector<4x60xf32>
    %17 = vector.extract_strided_slice %14 {offsets = [0, 2], sizes = [4, 60], strides = [1, 1]} : vector<4x64xf32> to vector<4x60xf32>
    %18 = vector.extract_strided_slice %14 {offsets = [0, 3], sizes = [4, 60], strides = [1, 1]} : vector<4x64xf32> to vector<4x60xf32>
    %19 = vector.extract_strided_slice %14 {offsets = [0, 4], sizes = [4, 60], strides = [1, 1]} : vector<4x64xf32> to vector<4x60xf32>
    %20 = tpu.concatenate %15, %16, %17, %18, %19 in 0 : vector<4x60xf32>, vector<4x60xf32>, vector<4x60xf32>, vector<4x60xf32>, vector<4x60xf32> -> vector<20x60xf32>
    %21 = tpu.concatenate %12, %20 in 1 : vector<20x60xf32>, vector<20x60xf32> -> vector<20x120xf32>
    %cst = arith.constant 1.000000e+00 : f32
    %22 = vector.broadcast %cst : f32 to vector<1x120xf32>
    %23 = tpu.concatenate %21, %22 in 0 : vector<20x120xf32>, vector<1x120xf32> -> vector<21x120xf32>
    %cst_8 = arith.constant dense<0.000000e+00> : vector<8x120xf32>
    %24 = tpu.matmul %1, %23, %cst_8 {dimension_numbers = #tpu.dot_dimension_numbers<[1], [0], [0], [1], [0, 0, 1, 1], [], []>} : vector<8x21xf32>, vector<21x120xf32>, vector<8x120xf32> -> vector<8x120xf32>
    %cst_9 = arith.constant 0.000000e+00 : f32
    %25 = vector.broadcast %cst_9 : f32 to vector<8x120xf32>
    %26 = arith.cmpf ogt, %24, %25 : vector<8x120xf32>
    %cst_10 = arith.constant 0.000000e+00 : f32
    %27 = vector.broadcast %cst_10 : f32 to vector<8x120xf32>
    %28 = arith.minimumf %24, %27 : vector<8x120xf32>
    %29 = math.exp %28 : vector<8x120xf32>
    %cst_11 = arith.constant 1.000000e+00 : f32
    %30 = vector.broadcast %cst_11 : f32 to vector<8x120xf32>
    %31 = arith.subf %29, %30 : vector<8x120xf32>
    %32 = arith.select %26, %24, %31 : vector<8x120xi1>, vector<8x120xf32>
    %c0_12 = arith.constant 0 : index
    %c0_13 = arith.constant 0 : index
    %33 = vector.load %arg2[%c0_12, %c0_13] : memref<120x28xf32, #tpu.memory_space<vmem>>, vector<120x28xf32>
    %cst_14 = arith.constant dense<0.000000e+00> : vector<8x28xf32>
    %34 = tpu.matmul %32, %33, %cst_14 {dimension_numbers = #tpu.dot_dimension_numbers<[1], [0], [0], [1], [0, 0, 1, 1], [], []>} : vector<8x120xf32>, vector<120x28xf32>, vector<8x28xf32> -> vector<8x28xf32>
    %35 = tpu.transpose %34, [1, 0] : vector<8x28xf32> -> vector<28x8xf32>
    %cst_15 = arith.constant dense<0.000000e+00> : vector<28x8xf32>
    %36 = tpu.matmul %35, %2, %cst_15 {dimension_numbers = #tpu.dot_dimension_numbers<[1], [0], [0], [1], [0, 0, 1, 1], [], []>} : vector<28x8xf32>, vector<8x8xf32>, vector<28x8xf32> -> vector<28x8xf32>
    %37 = vector.extract_strided_slice %4 {offsets = [0, 0], sizes = [1, 8], strides = [1, 1]} : vector<1x107xf32> to vector<1x8xf32>
    %38 = vector.broadcast %37 : vector<1x8xf32> to vector<28x8xf32>
    %39 = arith.addf %36, %38 : vector<28x8xf32>
    %c0_16 = arith.constant 0 : index
    %c0_17 = arith.constant 0 : index
    %40 = vector.load %arg3[%c0_16, %c0_17] : memref<28x28xf32, #tpu.memory_space<vmem>>, vector<28x28xf32>
    %c0_18 = arith.constant 0 : index
    %c0_19 = arith.constant 0 : index
    %c0_20 = arith.constant 0 : index
    %41 = vector.load %arg4[%c0_18, %c0_19, %c0_20] : memref<2x8x96xf32, #tpu.memory_space<vmem>>, vector<1x8x96xf32>
    %42 = vector.shape_cast %41 : vector<1x8x96xf32> to vector<8x96xf32>
    %c0_21 = arith.constant 0 : index
    %c0_22 = arith.constant 0 : index
    %c0_23 = arith.constant 0 : index
    %43 = vector.load %arg5[%c0_21, %c0_22, %c0_23] : memref<2x1x104xf32, #tpu.memory_space<vmem>>, vector<1x1x104xf32>
    %44 = vector.shape_cast %43 : vector<1x1x104xf32> to vector<1x104xf32>
    %45 = vector.extract_strided_slice %42 {offsets = [0, 0], sizes = [8, 24], strides = [1, 1]} : vector<8x96xf32> to vector<8x24xf32>
    %46 = vector.extract_strided_slice %42 {offsets = [0, 24], sizes = [8, 8], strides = [1, 1]} : vector<8x96xf32> to vector<8x8xf32>
    %47 = vector.extract_strided_slice %42 {offsets = [0, 32], sizes = [8, 32], strides = [1, 1]} : vector<8x96xf32> to vector<8x32xf32>
    %48 = vector.extract_strided_slice %42 {offsets = [0, 64], sizes = [8, 32], strides = [1, 1]} : vector<8x96xf32> to vector<8x32xf32>
    %cst_24 = arith.constant dense<0.000000e+00> : vector<28xf32>
    %49 = vector.multi_reduction <add>, %39, %cst_24 [1] : vector<28x8xf32> to vector<28xf32>
    %50 = vector.shape_cast %49 : vector<28xf32> to vector<28x1xf32>
    %cst_25 = arith.constant 8.000000e+00 : f32
    %51 = vector.broadcast %cst_25 : f32 to vector<28x1xf32>
    %52 = arith.divf %50, %51 : vector<28x1xf32>
    %53 = vector.broadcast %52 : vector<28x1xf32> to vector<28x8xf32>
    %54 = arith.subf %39, %53 : vector<28x8xf32>
    %55 = arith.mulf %54, %54 : vector<28x8xf32>
    %cst_26 = arith.constant dense<0.000000e+00> : vector<28xf32>
    %56 = vector.multi_reduction <add>, %55, %cst_26 [1] : vector<28x8xf32> to vector<28xf32>
    %57 = vector.shape_cast %56 : vector<28xf32> to vector<28x1xf32>
    %cst_27 = arith.constant 8.000000e+00 : f32
    %58 = vector.broadcast %cst_27 : f32 to vector<28x1xf32>
    %59 = arith.divf %57, %58 : vector<28x1xf32>
    %60 = vector.broadcast %52 : vector<28x1xf32> to vector<28x8xf32>
    %61 = arith.subf %39, %60 : vector<28x8xf32>
    %cst_28 = arith.constant 9.99999974E-6 : f32
    %62 = vector.broadcast %cst_28 : f32 to vector<28x1xf32>
    %63 = arith.addf %59, %62 : vector<28x1xf32>
    %64 = math.rsqrt %63 : vector<28x1xf32>
    %65 = vector.broadcast %64 : vector<28x1xf32> to vector<28x8xf32>
    %66 = arith.mulf %61, %65 : vector<28x8xf32>
    %67 = vector.extract_strided_slice %44 {offsets = [0, 0], sizes = [1, 8], strides = [1, 1]} : vector<1x104xf32> to vector<1x8xf32>
    %68 = vector.broadcast %67 : vector<1x8xf32> to vector<28x8xf32>
    %69 = arith.mulf %66, %68 : vector<28x8xf32>
    %70 = vector.extract_strided_slice %44 {offsets = [0, 8], sizes = [1, 8], strides = [1, 1]} : vector<1x104xf32> to vector<1x8xf32>
    %71 = vector.broadcast %70 : vector<1x8xf32> to vector<28x8xf32>
    %72 = arith.addf %69, %71 : vector<28x8xf32>
    %cst_29 = arith.constant dense<0.000000e+00> : vector<28x24xf32>
    %73 = tpu.matmul %72, %45, %cst_29 {dimension_numbers = #tpu.dot_dimension_numbers<[1], [0], [0], [1], [0, 0, 1, 1], [], []>} : vector<28x8xf32>, vector<8x24xf32>, vector<28x24xf32> -> vector<28x24xf32>
    %74 = vector.extract_strided_slice %44 {offsets = [0, 16], sizes = [1, 24], strides = [1, 1]} : vector<1x104xf32> to vector<1x24xf32>
    %75 = vector.broadcast %74 : vector<1x24xf32> to vector<28x24xf32>
    %76 = arith.addf %73, %75 : vector<28x24xf32>
    %77 = vector.extract_strided_slice %76 {offsets = [0, 0], sizes = [28, 4], strides = [1, 1]} : vector<28x24xf32> to vector<28x4xf32>
    %78 = vector.extract_strided_slice %76 {offsets = [0, 8], sizes = [28, 4], strides = [1, 1]} : vector<28x24xf32> to vector<28x4xf32>
    %79 = vector.extract_strided_slice %76 {offsets = [0, 16], sizes = [28, 4], strides = [1, 1]} : vector<28x24xf32> to vector<28x4xf32>
    %cst_30 = arith.constant dense<0.000000e+00> : vector<28x28xf32>
    %80 = tpu.matmul %77, %78, %cst_30 {dimension_numbers = #tpu.dot_dimension_numbers<[1], [1], [0], [0], [0, 0, 1, 0], [], []>} : vector<28x4xf32>, vector<28x4xf32>, vector<28x28xf32> -> vector<28x28xf32>
    %cst_31 = arith.constant 0.353553385 : f32
    %81 = vector.broadcast %cst_31 : f32 to vector<28x28xf32>
    %82 = arith.mulf %80, %81 : vector<28x28xf32>
    %83 = arith.addf %82, %40 : vector<28x28xf32>
    %cst_32 = arith.constant dense<0xFF800000> : vector<28xf32>
    %84 = vector.multi_reduction <maximumf>, %83, %cst_32 [1] : vector<28x28xf32> to vector<28xf32>
    %85 = vector.shape_cast %84 : vector<28xf32> to vector<28x1xf32>
    %86 = vector.broadcast %85 : vector<28x1xf32> to vector<28x28xf32>
    %87 = arith.subf %83, %86 : vector<28x28xf32>
    %88 = math.exp %87 : vector<28x28xf32>
    %cst_33 = arith.constant dense<0.000000e+00> : vector<28xf32>
    %89 = vector.multi_reduction <add>, %88, %cst_33 [1] : vector<28x28xf32> to vector<28xf32>
    %90 = vector.shape_cast %89 : vector<28xf32> to vector<28x1xf32>
    %91 = tpu.reciprocal %90 {approx = true} : vector<28x1xf32> -> vector<28x1xf32>
    %92 = vector.broadcast %91 : vector<28x1xf32> to vector<28x28xf32>
    %93 = arith.mulf %88, %92 : vector<28x28xf32>
    %cst_34 = arith.constant dense<0.000000e+00> : vector<28x4xf32>
    %94 = tpu.matmul %93, %79, %cst_34 {dimension_numbers = #tpu.dot_dimension_numbers<[1], [0], [0], [1], [0, 0, 1, 1], [], []>} : vector<28x28xf32>, vector<28x4xf32>, vector<28x4xf32> -> vector<28x4xf32>
    %95 = vector.extract_strided_slice %46 {offsets = [0, 0], sizes = [4, 8], strides = [1, 1]} : vector<8x8xf32> to vector<4x8xf32>
    %cst_35 = arith.constant dense<0.000000e+00> : vector<28x8xf32>
    %96 = tpu.matmul %94, %95, %cst_35 {dimension_numbers = #tpu.dot_dimension_numbers<[1], [0], [0], [1], [0, 0, 1, 1], [], []>} : vector<28x4xf32>, vector<4x8xf32>, vector<28x8xf32> -> vector<28x8xf32>
    %97 = vector.extract_strided_slice %76 {offsets = [0, 4], sizes = [28, 4], strides = [1, 1]} : vector<28x24xf32> to vector<28x4xf32>
    %98 = vector.extract_strided_slice %76 {offsets = [0, 12], sizes = [28, 4], strides = [1, 1]} : vector<28x24xf32> to vector<28x4xf32>
    %99 = vector.extract_strided_slice %76 {offsets = [0, 20], sizes = [28, 4], strides = [1, 1]} : vector<28x24xf32> to vector<28x4xf32>
    %cst_36 = arith.constant dense<0.000000e+00> : vector<28x28xf32>
    %100 = tpu.matmul %97, %98, %cst_36 {dimension_numbers = #tpu.dot_dimension_numbers<[1], [1], [0], [0], [0, 0, 1, 0], [], []>} : vector<28x4xf32>, vector<28x4xf32>, vector<28x28xf32> -> vector<28x28xf32>
    %cst_37 = arith.constant 0.353553385 : f32
    %101 = vector.broadcast %cst_37 : f32 to vector<28x28xf32>
    %102 = arith.mulf %100, %101 : vector<28x28xf32>
    %103 = arith.addf %102, %40 : vector<28x28xf32>
    %cst_38 = arith.constant dense<0xFF800000> : vector<28xf32>
    %104 = vector.multi_reduction <maximumf>, %103, %cst_38 [1] : vector<28x28xf32> to vector<28xf32>
    %105 = vector.shape_cast %104 : vector<28xf32> to vector<28x1xf32>
    %106 = vector.broadcast %105 : vector<28x1xf32> to vector<28x28xf32>
    %107 = arith.subf %103, %106 : vector<28x28xf32>
    %108 = math.exp %107 : vector<28x28xf32>
    %cst_39 = arith.constant dense<0.000000e+00> : vector<28xf32>
    %109 = vector.multi_reduction <add>, %108, %cst_39 [1] : vector<28x28xf32> to vector<28xf32>
    %110 = vector.shape_cast %109 : vector<28xf32> to vector<28x1xf32>
    %111 = tpu.reciprocal %110 {approx = true} : vector<28x1xf32> -> vector<28x1xf32>
    %112 = vector.broadcast %111 : vector<28x1xf32> to vector<28x28xf32>
    %113 = arith.mulf %108, %112 : vector<28x28xf32>
    %cst_40 = arith.constant dense<0.000000e+00> : vector<28x4xf32>
    %114 = tpu.matmul %113, %99, %cst_40 {dimension_numbers = #tpu.dot_dimension_numbers<[1], [0], [0], [1], [0, 0, 1, 1], [], []>} : vector<28x28xf32>, vector<28x4xf32>, vector<28x4xf32> -> vector<28x4xf32>
    %115 = vector.extract_strided_slice %46 {offsets = [4, 0], sizes = [4, 8], strides = [1, 1]} : vector<8x8xf32> to vector<4x8xf32>
    %cst_41 = arith.constant dense<0.000000e+00> : vector<28x8xf32>
    %116 = tpu.matmul %114, %115, %cst_41 {dimension_numbers = #tpu.dot_dimension_numbers<[1], [0], [0], [1], [0, 0, 1, 1], [], []>} : vector<28x4xf32>, vector<4x8xf32>, vector<28x8xf32> -> vector<28x8xf32>
    %117 = arith.addf %96, %116 : vector<28x8xf32>
    %118 = arith.addf %39, %117 : vector<28x8xf32>
    %119 = vector.extract_strided_slice %44 {offsets = [0, 40], sizes = [1, 8], strides = [1, 1]} : vector<1x104xf32> to vector<1x8xf32>
    %120 = vector.broadcast %119 : vector<1x8xf32> to vector<28x8xf32>
    %121 = arith.addf %118, %120 : vector<28x8xf32>
    %cst_42 = arith.constant dense<0.000000e+00> : vector<28xf32>
    %122 = vector.multi_reduction <add>, %121, %cst_42 [1] : vector<28x8xf32> to vector<28xf32>
    %123 = vector.shape_cast %122 : vector<28xf32> to vector<28x1xf32>
    %cst_43 = arith.constant 8.000000e+00 : f32
    %124 = vector.broadcast %cst_43 : f32 to vector<28x1xf32>
    %125 = arith.divf %123, %124 : vector<28x1xf32>
    %126 = vector.broadcast %125 : vector<28x1xf32> to vector<28x8xf32>
    %127 = arith.subf %121, %126 : vector<28x8xf32>
    %128 = arith.mulf %127, %127 : vector<28x8xf32>
    %cst_44 = arith.constant dense<0.000000e+00> : vector<28xf32>
    %129 = vector.multi_reduction <add>, %128, %cst_44 [1] : vector<28x8xf32> to vector<28xf32>
    %130 = vector.shape_cast %129 : vector<28xf32> to vector<28x1xf32>
    %cst_45 = arith.constant 8.000000e+00 : f32
    %131 = vector.broadcast %cst_45 : f32 to vector<28x1xf32>
    %132 = arith.divf %130, %131 : vector<28x1xf32>
    %133 = vector.broadcast %125 : vector<28x1xf32> to vector<28x8xf32>
    %134 = arith.subf %121, %133 : vector<28x8xf32>
    %cst_46 = arith.constant 9.99999974E-6 : f32
    %135 = vector.broadcast %cst_46 : f32 to vector<28x1xf32>
    %136 = arith.addf %132, %135 : vector<28x1xf32>
    %137 = math.rsqrt %136 : vector<28x1xf32>
    %138 = vector.broadcast %137 : vector<28x1xf32> to vector<28x8xf32>
    %139 = arith.mulf %134, %138 : vector<28x8xf32>
    %140 = vector.extract_strided_slice %44 {offsets = [0, 48], sizes = [1, 8], strides = [1, 1]} : vector<1x104xf32> to vector<1x8xf32>
    %141 = vector.broadcast %140 : vector<1x8xf32> to vector<28x8xf32>
    %142 = arith.mulf %139, %141 : vector<28x8xf32>
    %143 = vector.extract_strided_slice %44 {offsets = [0, 56], sizes = [1, 8], strides = [1, 1]} : vector<1x104xf32> to vector<1x8xf32>
    %144 = vector.broadcast %143 : vector<1x8xf32> to vector<28x8xf32>
    %145 = arith.addf %142, %144 : vector<28x8xf32>
    %cst_47 = arith.constant dense<0.000000e+00> : vector<28x32xf32>
    %146 = tpu.matmul %145, %47, %cst_47 {dimension_numbers = #tpu.dot_dimension_numbers<[1], [0], [0], [1], [0, 0, 1, 1], [], []>} : vector<28x8xf32>, vector<8x32xf32>, vector<28x32xf32> -> vector<28x32xf32>
    %147 = vector.extract_strided_slice %44 {offsets = [0, 64], sizes = [1, 32], strides = [1, 1]} : vector<1x104xf32> to vector<1x32xf32>
    %148 = vector.broadcast %147 : vector<1x32xf32> to vector<28x32xf32>
    %149 = arith.addf %146, %148 : vector<28x32xf32>
    %cst_48 = arith.constant 5.000000e-01 : f32
    %150 = vector.broadcast %cst_48 : f32 to vector<28x32xf32>
    %151 = arith.mulf %150, %149 : vector<28x32xf32>
    %cst_49 = arith.constant 0.707106769 : f32
    %152 = vector.broadcast %cst_49 : f32 to vector<28x32xf32>
    %153 = arith.mulf %149, %152 : vector<28x32xf32>
    %154 = math.erf %153 : vector<28x32xf32>
    %cst_50 = arith.constant 1.000000e+00 : f32
    %155 = vector.broadcast %cst_50 : f32 to vector<28x32xf32>
    %156 = arith.addf %155, %154 : vector<28x32xf32>
    %157 = arith.mulf %151, %156 : vector<28x32xf32>
    %cst_51 = arith.constant dense<0.000000e+00> : vector<28x8xf32>
    %158 = tpu.matmul %157, %48, %cst_51 {dimension_numbers = #tpu.dot_dimension_numbers<[1], [1], [0], [0], [0, 0, 1, 0], [], []>} : vector<28x32xf32>, vector<8x32xf32>, vector<28x8xf32> -> vector<28x8xf32>
    %159 = vector.extract_strided_slice %44 {offsets = [0, 96], sizes = [1, 8], strides = [1, 1]} : vector<1x104xf32> to vector<1x8xf32>
    %160 = vector.broadcast %159 : vector<1x8xf32> to vector<28x8xf32>
    %161 = arith.addf %158, %160 : vector<28x8xf32>
    %162 = arith.addf %121, %161 : vector<28x8xf32>
    %c1_52 = arith.constant 1 : index
    %c0_53 = arith.constant 0 : index
    %c0_54 = arith.constant 0 : index
    %163 = vector.load %arg4[%c1_52, %c0_53, %c0_54] : memref<2x8x96xf32, #tpu.memory_space<vmem>>, vector<1x8x96xf32>
    %164 = vector.shape_cast %163 : vector<1x8x96xf32> to vector<8x96xf32>
    %c1_55 = arith.constant 1 : index
    %c0_56 = arith.constant 0 : index
    %c0_57 = arith.constant 0 : index
    %165 = vector.load %arg5[%c1_55, %c0_56, %c0_57] : memref<2x1x104xf32, #tpu.memory_space<vmem>>, vector<1x1x104xf32>
    %166 = vector.shape_cast %165 : vector<1x1x104xf32> to vector<1x104xf32>
    %167 = vector.extract_strided_slice %164 {offsets = [0, 0], sizes = [8, 24], strides = [1, 1]} : vector<8x96xf32> to vector<8x24xf32>
    %168 = vector.extract_strided_slice %164 {offsets = [0, 24], sizes = [8, 8], strides = [1, 1]} : vector<8x96xf32> to vector<8x8xf32>
    %169 = vector.extract_strided_slice %164 {offsets = [0, 32], sizes = [8, 32], strides = [1, 1]} : vector<8x96xf32> to vector<8x32xf32>
    %170 = vector.extract_strided_slice %164 {offsets = [0, 64], sizes = [8, 32], strides = [1, 1]} : vector<8x96xf32> to vector<8x32xf32>
    %cst_58 = arith.constant dense<0.000000e+00> : vector<28xf32>
    %171 = vector.multi_reduction <add>, %162, %cst_58 [1] : vector<28x8xf32> to vector<28xf32>
    %172 = vector.shape_cast %171 : vector<28xf32> to vector<28x1xf32>
    %cst_59 = arith.constant 8.000000e+00 : f32
    %173 = vector.broadcast %cst_59 : f32 to vector<28x1xf32>
    %174 = arith.divf %172, %173 : vector<28x1xf32>
    %175 = vector.broadcast %174 : vector<28x1xf32> to vector<28x8xf32>
    %176 = arith.subf %162, %175 : vector<28x8xf32>
    %177 = arith.mulf %176, %176 : vector<28x8xf32>
    %cst_60 = arith.constant dense<0.000000e+00> : vector<28xf32>
    %178 = vector.multi_reduction <add>, %177, %cst_60 [1] : vector<28x8xf32> to vector<28xf32>
    %179 = vector.shape_cast %178 : vector<28xf32> to vector<28x1xf32>
    %cst_61 = arith.constant 8.000000e+00 : f32
    %180 = vector.broadcast %cst_61 : f32 to vector<28x1xf32>
    %181 = arith.divf %179, %180 : vector<28x1xf32>
    %182 = vector.broadcast %174 : vector<28x1xf32> to vector<28x8xf32>
    %183 = arith.subf %162, %182 : vector<28x8xf32>
    %cst_62 = arith.constant 9.99999974E-6 : f32
    %184 = vector.broadcast %cst_62 : f32 to vector<28x1xf32>
    %185 = arith.addf %181, %184 : vector<28x1xf32>
    %186 = math.rsqrt %185 : vector<28x1xf32>
    %187 = vector.broadcast %186 : vector<28x1xf32> to vector<28x8xf32>
    %188 = arith.mulf %183, %187 : vector<28x8xf32>
    %189 = vector.extract_strided_slice %166 {offsets = [0, 0], sizes = [1, 8], strides = [1, 1]} : vector<1x104xf32> to vector<1x8xf32>
    %190 = vector.broadcast %189 : vector<1x8xf32> to vector<28x8xf32>
    %191 = arith.mulf %188, %190 : vector<28x8xf32>
    %192 = vector.extract_strided_slice %166 {offsets = [0, 8], sizes = [1, 8], strides = [1, 1]} : vector<1x104xf32> to vector<1x8xf32>
    %193 = vector.broadcast %192 : vector<1x8xf32> to vector<28x8xf32>
    %194 = arith.addf %191, %193 : vector<28x8xf32>
    %cst_63 = arith.constant dense<0.000000e+00> : vector<28x24xf32>
    %195 = tpu.matmul %194, %167, %cst_63 {dimension_numbers = #tpu.dot_dimension_numbers<[1], [0], [0], [1], [0, 0, 1, 1], [], []>} : vector<28x8xf32>, vector<8x24xf32>, vector<28x24xf32> -> vector<28x24xf32>
    %196 = vector.extract_strided_slice %166 {offsets = [0, 16], sizes = [1, 24], strides = [1, 1]} : vector<1x104xf32> to vector<1x24xf32>
    %197 = vector.broadcast %196 : vector<1x24xf32> to vector<28x24xf32>
    %198 = arith.addf %195, %197 : vector<28x24xf32>
    %199 = vector.extract_strided_slice %198 {offsets = [0, 0], sizes = [28, 4], strides = [1, 1]} : vector<28x24xf32> to vector<28x4xf32>
    %200 = vector.extract_strided_slice %198 {offsets = [0, 8], sizes = [28, 4], strides = [1, 1]} : vector<28x24xf32> to vector<28x4xf32>
    %201 = vector.extract_strided_slice %198 {offsets = [0, 16], sizes = [28, 4], strides = [1, 1]} : vector<28x24xf32> to vector<28x4xf32>
    %cst_64 = arith.constant dense<0.000000e+00> : vector<28x28xf32>
    %202 = tpu.matmul %199, %200, %cst_64 {dimension_numbers = #tpu.dot_dimension_numbers<[1], [1], [0], [0], [0, 0, 1, 0], [], []>} : vector<28x4xf32>, vector<28x4xf32>, vector<28x28xf32> -> vector<28x28xf32>
    %cst_65 = arith.constant 0.353553385 : f32
    %203 = vector.broadcast %cst_65 : f32 to vector<28x28xf32>
    %204 = arith.mulf %202, %203 : vector<28x28xf32>
    %205 = arith.addf %204, %40 : vector<28x28xf32>
    %cst_66 = arith.constant dense<0xFF800000> : vector<28xf32>
    %206 = vector.multi_reduction <maximumf>, %205, %cst_66 [1] : vector<28x28xf32> to vector<28xf32>
    %207 = vector.shape_cast %206 : vector<28xf32> to vector<28x1xf32>
    %208 = vector.broadcast %207 : vector<28x1xf32> to vector<28x28xf32>
    %209 = arith.subf %205, %208 : vector<28x28xf32>
    %210 = math.exp %209 : vector<28x28xf32>
    %cst_67 = arith.constant dense<0.000000e+00> : vector<28xf32>
    %211 = vector.multi_reduction <add>, %210, %cst_67 [1] : vector<28x28xf32> to vector<28xf32>
    %212 = vector.shape_cast %211 : vector<28xf32> to vector<28x1xf32>
    %213 = tpu.reciprocal %212 {approx = true} : vector<28x1xf32> -> vector<28x1xf32>
    %214 = vector.broadcast %213 : vector<28x1xf32> to vector<28x28xf32>
    %215 = arith.mulf %210, %214 : vector<28x28xf32>
    %cst_68 = arith.constant dense<0.000000e+00> : vector<28x4xf32>
    %216 = tpu.matmul %215, %201, %cst_68 {dimension_numbers = #tpu.dot_dimension_numbers<[1], [0], [0], [1], [0, 0, 1, 1], [], []>} : vector<28x28xf32>, vector<28x4xf32>, vector<28x4xf32> -> vector<28x4xf32>
    %217 = vector.extract_strided_slice %168 {offsets = [0, 0], sizes = [4, 8], strides = [1, 1]} : vector<8x8xf32> to vector<4x8xf32>
    %cst_69 = arith.constant dense<0.000000e+00> : vector<28x8xf32>
    %218 = tpu.matmul %216, %217, %cst_69 {dimension_numbers = #tpu.dot_dimension_numbers<[1], [0], [0], [1], [0, 0, 1, 1], [], []>} : vector<28x4xf32>, vector<4x8xf32>, vector<28x8xf32> -> vector<28x8xf32>
    %219 = vector.extract_strided_slice %198 {offsets = [0, 4], sizes = [28, 4], strides = [1, 1]} : vector<28x24xf32> to vector<28x4xf32>
    %220 = vector.extract_strided_slice %198 {offsets = [0, 12], sizes = [28, 4], strides = [1, 1]} : vector<28x24xf32> to vector<28x4xf32>
    %221 = vector.extract_strided_slice %198 {offsets = [0, 20], sizes = [28, 4], strides = [1, 1]} : vector<28x24xf32> to vector<28x4xf32>
    %cst_70 = arith.constant dense<0.000000e+00> : vector<28x28xf32>
    %222 = tpu.matmul %219, %220, %cst_70 {dimension_numbers = #tpu.dot_dimension_numbers<[1], [1], [0], [0], [0, 0, 1, 0], [], []>} : vector<28x4xf32>, vector<28x4xf32>, vector<28x28xf32> -> vector<28x28xf32>
    %cst_71 = arith.constant 0.353553385 : f32
    %223 = vector.broadcast %cst_71 : f32 to vector<28x28xf32>
    %224 = arith.mulf %222, %223 : vector<28x28xf32>
    %225 = arith.addf %224, %40 : vector<28x28xf32>
    %cst_72 = arith.constant dense<0xFF800000> : vector<28xf32>
    %226 = vector.multi_reduction <maximumf>, %225, %cst_72 [1] : vector<28x28xf32> to vector<28xf32>
    %227 = vector.shape_cast %226 : vector<28xf32> to vector<28x1xf32>
    %228 = vector.broadcast %227 : vector<28x1xf32> to vector<28x28xf32>
    %229 = arith.subf %225, %228 : vector<28x28xf32>
    %230 = math.exp %229 : vector<28x28xf32>
    %cst_73 = arith.constant dense<0.000000e+00> : vector<28xf32>
    %231 = vector.multi_reduction <add>, %230, %cst_73 [1] : vector<28x28xf32> to vector<28xf32>
    %232 = vector.shape_cast %231 : vector<28xf32> to vector<28x1xf32>
    %233 = tpu.reciprocal %232 {approx = true} : vector<28x1xf32> -> vector<28x1xf32>
    %234 = vector.broadcast %233 : vector<28x1xf32> to vector<28x28xf32>
    %235 = arith.mulf %230, %234 : vector<28x28xf32>
    %cst_74 = arith.constant dense<0.000000e+00> : vector<28x4xf32>
    %236 = tpu.matmul %235, %221, %cst_74 {dimension_numbers = #tpu.dot_dimension_numbers<[1], [0], [0], [1], [0, 0, 1, 1], [], []>} : vector<28x28xf32>, vector<28x4xf32>, vector<28x4xf32> -> vector<28x4xf32>
    %237 = vector.extract_strided_slice %168 {offsets = [4, 0], sizes = [4, 8], strides = [1, 1]} : vector<8x8xf32> to vector<4x8xf32>
    %cst_75 = arith.constant dense<0.000000e+00> : vector<28x8xf32>
    %238 = tpu.matmul %236, %237, %cst_75 {dimension_numbers = #tpu.dot_dimension_numbers<[1], [0], [0], [1], [0, 0, 1, 1], [], []>} : vector<28x4xf32>, vector<4x8xf32>, vector<28x8xf32> -> vector<28x8xf32>
    %239 = arith.addf %218, %238 : vector<28x8xf32>
    %240 = arith.addf %162, %239 : vector<28x8xf32>
    %241 = vector.extract_strided_slice %166 {offsets = [0, 40], sizes = [1, 8], strides = [1, 1]} : vector<1x104xf32> to vector<1x8xf32>
    %242 = vector.broadcast %241 : vector<1x8xf32> to vector<28x8xf32>
    %243 = arith.addf %240, %242 : vector<28x8xf32>
    %cst_76 = arith.constant dense<0.000000e+00> : vector<28xf32>
    %244 = vector.multi_reduction <add>, %243, %cst_76 [1] : vector<28x8xf32> to vector<28xf32>
    %245 = vector.shape_cast %244 : vector<28xf32> to vector<28x1xf32>
    %cst_77 = arith.constant 8.000000e+00 : f32
    %246 = vector.broadcast %cst_77 : f32 to vector<28x1xf32>
    %247 = arith.divf %245, %246 : vector<28x1xf32>
    %248 = vector.broadcast %247 : vector<28x1xf32> to vector<28x8xf32>
    %249 = arith.subf %243, %248 : vector<28x8xf32>
    %250 = arith.mulf %249, %249 : vector<28x8xf32>
    %cst_78 = arith.constant dense<0.000000e+00> : vector<28xf32>
    %251 = vector.multi_reduction <add>, %250, %cst_78 [1] : vector<28x8xf32> to vector<28xf32>
    %252 = vector.shape_cast %251 : vector<28xf32> to vector<28x1xf32>
    %cst_79 = arith.constant 8.000000e+00 : f32
    %253 = vector.broadcast %cst_79 : f32 to vector<28x1xf32>
    %254 = arith.divf %252, %253 : vector<28x1xf32>
    %255 = vector.broadcast %247 : vector<28x1xf32> to vector<28x8xf32>
    %256 = arith.subf %243, %255 : vector<28x8xf32>
    %cst_80 = arith.constant 9.99999974E-6 : f32
    %257 = vector.broadcast %cst_80 : f32 to vector<28x1xf32>
    %258 = arith.addf %254, %257 : vector<28x1xf32>
    %259 = math.rsqrt %258 : vector<28x1xf32>
    %260 = vector.broadcast %259 : vector<28x1xf32> to vector<28x8xf32>
    %261 = arith.mulf %256, %260 : vector<28x8xf32>
    %262 = vector.extract_strided_slice %166 {offsets = [0, 48], sizes = [1, 8], strides = [1, 1]} : vector<1x104xf32> to vector<1x8xf32>
    %263 = vector.broadcast %262 : vector<1x8xf32> to vector<28x8xf32>
    %264 = arith.mulf %261, %263 : vector<28x8xf32>
    %265 = vector.extract_strided_slice %166 {offsets = [0, 56], sizes = [1, 8], strides = [1, 1]} : vector<1x104xf32> to vector<1x8xf32>
    %266 = vector.broadcast %265 : vector<1x8xf32> to vector<28x8xf32>
    %267 = arith.addf %264, %266 : vector<28x8xf32>
    %cst_81 = arith.constant dense<0.000000e+00> : vector<28x32xf32>
    %268 = tpu.matmul %267, %169, %cst_81 {dimension_numbers = #tpu.dot_dimension_numbers<[1], [0], [0], [1], [0, 0, 1, 1], [], []>} : vector<28x8xf32>, vector<8x32xf32>, vector<28x32xf32> -> vector<28x32xf32>
    %269 = vector.extract_strided_slice %166 {offsets = [0, 64], sizes = [1, 32], strides = [1, 1]} : vector<1x104xf32> to vector<1x32xf32>
    %270 = vector.broadcast %269 : vector<1x32xf32> to vector<28x32xf32>
    %271 = arith.addf %268, %270 : vector<28x32xf32>
    %cst_82 = arith.constant 5.000000e-01 : f32
    %272 = vector.broadcast %cst_82 : f32 to vector<28x32xf32>
    %273 = arith.mulf %272, %271 : vector<28x32xf32>
    %cst_83 = arith.constant 0.707106769 : f32
    %274 = vector.broadcast %cst_83 : f32 to vector<28x32xf32>
    %275 = arith.mulf %271, %274 : vector<28x32xf32>
    %276 = math.erf %275 : vector<28x32xf32>
    %cst_84 = arith.constant 1.000000e+00 : f32
    %277 = vector.broadcast %cst_84 : f32 to vector<28x32xf32>
    %278 = arith.addf %277, %276 : vector<28x32xf32>
    %279 = arith.mulf %273, %278 : vector<28x32xf32>
    %cst_85 = arith.constant dense<0.000000e+00> : vector<28x8xf32>
    %280 = tpu.matmul %279, %170, %cst_85 {dimension_numbers = #tpu.dot_dimension_numbers<[1], [1], [0], [0], [0, 0, 1, 0], [], []>} : vector<28x32xf32>, vector<8x32xf32>, vector<28x8xf32> -> vector<28x8xf32>
    %281 = vector.extract_strided_slice %166 {offsets = [0, 96], sizes = [1, 8], strides = [1, 1]} : vector<1x104xf32> to vector<1x8xf32>
    %282 = vector.broadcast %281 : vector<1x8xf32> to vector<28x8xf32>
    %283 = arith.addf %280, %282 : vector<28x8xf32>
    %284 = arith.addf %243, %283 : vector<28x8xf32>
    %cst_86 = arith.constant dense<0.000000e+00> : vector<28x112xf32>
    %285 = tpu.matmul %284, %3, %cst_86 {dimension_numbers = #tpu.dot_dimension_numbers<[1], [0], [0], [1], [0, 0, 1, 1], [], []>} : vector<28x8xf32>, vector<8x112xf32>, vector<28x112xf32> -> vector<28x112xf32>
    %c0_87 = arith.constant 0 : index
    %c0_88 = arith.constant 0 : index
    %286 = vector.load %arg6[%c0_87, %c0_88] : memref<28x112xf32, #tpu.memory_space<vmem>>, vector<28x112xf32>
    %287 = arith.mulf %285, %286 : vector<28x112xf32>
    %c0_89 = arith.constant 0 : index
    %c0_90 = arith.constant 0 : index
    %288 = vector.load %arg7[%c0_89, %c0_90] : memref<2x28xf32, #tpu.memory_space<vmem>>, vector<2x28xf32>
    %cst_91 = arith.constant dense<0.000000e+00> : vector<2x112xf32>
    %289 = tpu.matmul %288, %287, %cst_91 {dimension_numbers = #tpu.dot_dimension_numbers<[1], [0], [0], [1], [0, 0, 1, 1], [], []>} : vector<2x28xf32>, vector<28x112xf32>, vector<2x112xf32> -> vector<2x112xf32>
    %c0_92 = arith.constant 0 : index
    %c0_93 = arith.constant 0 : index
    %290 = vector.load %arg8[%c0_92, %c0_93] : memref<112x64xf32, #tpu.memory_space<vmem>>, vector<112x64xf32>
    %cst_94 = arith.constant dense<0.000000e+00> : vector<2x64xf32>
    %291 = tpu.matmul %289, %290, %cst_94 {dimension_numbers = #tpu.dot_dimension_numbers<[1], [0], [0], [1], [0, 0, 1, 1], [], []>} : vector<2x112xf32>, vector<112x64xf32>, vector<2x64xf32> -> vector<2x64xf32>
    %292 = vector.extract_strided_slice %4 {offsets = [0, 8], sizes = [1, 64], strides = [1, 1]} : vector<1x107xf32> to vector<1x64xf32>
    %293 = vector.broadcast %292 : vector<1x64xf32> to vector<2x64xf32>
    %294 = arith.addf %291, %293 : vector<2x64xf32>
    %cst_95 = arith.constant 0.000000e+00 : f32
    %295 = vector.broadcast %cst_95 : f32 to vector<2x64xf32>
    %296 = arith.cmpf ogt, %294, %295 : vector<2x64xf32>
    %cst_96 = arith.constant 0.000000e+00 : f32
    %297 = vector.broadcast %cst_96 : f32 to vector<2x64xf32>
    %298 = arith.minimumf %294, %297 : vector<2x64xf32>
    %299 = math.exp %298 : vector<2x64xf32>
    %cst_97 = arith.constant 1.000000e+00 : f32
    %300 = vector.broadcast %cst_97 : f32 to vector<2x64xf32>
    %301 = arith.subf %299, %300 : vector<2x64xf32>
    %302 = arith.select %296, %294, %301 : vector<2x64xi1>, vector<2x64xf32>
    %c0_98 = arith.constant 0 : index
    %c0_99 = arith.constant 0 : index
    %303 = vector.load %arg9[%c0_98, %c0_99] : memref<64x32xf32, #tpu.memory_space<vmem>>, vector<64x32xf32>
    %cst_100 = arith.constant dense<0.000000e+00> : vector<2x32xf32>
    %304 = tpu.matmul %302, %303, %cst_100 {dimension_numbers = #tpu.dot_dimension_numbers<[1], [0], [0], [1], [0, 0, 1, 1], [], []>} : vector<2x64xf32>, vector<64x32xf32>, vector<2x32xf32> -> vector<2x32xf32>
    %305 = vector.extract_strided_slice %4 {offsets = [0, 72], sizes = [1, 32], strides = [1, 1]} : vector<1x107xf32> to vector<1x32xf32>
    %306 = vector.broadcast %305 : vector<1x32xf32> to vector<2x32xf32>
    %307 = arith.addf %304, %306 : vector<2x32xf32>
    %cst_101 = arith.constant 0.000000e+00 : f32
    %308 = vector.broadcast %cst_101 : f32 to vector<2x32xf32>
    %309 = arith.cmpf ogt, %307, %308 : vector<2x32xf32>
    %cst_102 = arith.constant 0.000000e+00 : f32
    %310 = vector.broadcast %cst_102 : f32 to vector<2x32xf32>
    %311 = arith.minimumf %307, %310 : vector<2x32xf32>
    %312 = math.exp %311 : vector<2x32xf32>
    %cst_103 = arith.constant 1.000000e+00 : f32
    %313 = vector.broadcast %cst_103 : f32 to vector<2x32xf32>
    %314 = arith.subf %312, %313 : vector<2x32xf32>
    %315 = arith.select %309, %307, %314 : vector<2x32xi1>, vector<2x32xf32>
    %c0_104 = arith.constant 0 : index
    %c0_105 = arith.constant 0 : index
    %316 = vector.load %arg10[%c0_104, %c0_105] : memref<32x3xf32, #tpu.memory_space<vmem>>, vector<32x3xf32>
    %cst_106 = arith.constant dense<0.000000e+00> : vector<2x3xf32>
    %317 = tpu.matmul %315, %316, %cst_106 {dimension_numbers = #tpu.dot_dimension_numbers<[1], [0], [0], [1], [0, 0, 1, 1], [], []>} : vector<2x32xf32>, vector<32x3xf32>, vector<2x3xf32> -> vector<2x3xf32>
    %318 = vector.extract_strided_slice %4 {offsets = [0, 104], sizes = [1, 3], strides = [1, 1]} : vector<1x107xf32> to vector<1x3xf32>
    %319 = vector.broadcast %318 : vector<1x3xf32> to vector<2x3xf32>
    %320 = arith.addf %317, %319 : vector<2x3xf32>
    %c0_107 = arith.constant 0 : index
    %c0_108 = arith.constant 0 : index
    %321 = vector.load %arg12[%c0_107, %c0_108] : memref<2x3xf32, #tpu.memory_space<vmem>>, vector<2x3xf32>
    tpu.vector_store %arg12[%c0_107, %c0_108], %320 {strides = array<i32>} : memref<2x3xf32, #tpu.memory_space<vmem>>, vector<2x3xf32>,
    return
  }
}

</mosaic_0001>

<bundles_post_ra>
// kernel: conformer_forward.1
= control target key start
LH: loop header
LB: loop body
LE: loop exit
PB: predicated region body
PF: predicated region fallthrough
CT: control target
= control target key end

     0   :  { %s5249_s0 = inlined_call_operand.vmem [shape: f32[2,4,64], index: 0, kind: input, shape index: {}]   ;;  %s5250_s1 = inlined_call_operand.vmem [shape: f32[8,141], index: 1, kind: input, shape index: {}]   ;;  %s5251_s2 = inlined_call_operand.vmem [shape: f32[120,28], index: 2, kind: input, shape index: {}]   ;;  %s5252_s3 = inlined_call_operand.vmem [shape: f32[28,28], index: 3, kind: input, shape index: {}]   ;;  %s5253_s4 = inlined_call_operand.vmem [shape: f32[2,8,96], index: 4, kind: input, shape index: {}]   ;;  %s5254_s5 = inlined_call_operand.vmem [shape: f32[2,1,104], index: 5, kind: input, shape index: {}]   ;;  %s5255_s6 = inlined_call_operand.vmem [shape: f32[28,112], index: 6, kind: input, shape index: {}]   ;;  %s5256_s7 = inlined_call_operand.vmem [shape: f32[2,28], index: 7, kind: input, shape index: {}]   ;;  %s5257_s8 = inlined_call_operand.vmem [shape: f32[112,64], index: 8, kind: input, shape index: {}]   ;;  %s5258_s9 = inlined_call_operand.vmem [shape: f32[64,32], index: 9, kind: input, shape index: {}]   ;;  %s5259_s10 = inlined_call_operand.vmem [shape: f32[32,3], index: 10, kind: input, shape index: {}]   ;;  %s5260_s11 = inlined_call_operand.vmem [shape: f32[1,107], index: 11, kind: input, shape index: {}]   ;;  %s5261_s12 = inlined_call_operand.hbm [shape: f32[2,3], index: 12, kind: output, shape index: {}]  }
   0x1   :  { %v3368_v0 = vld [vmem:[%s5249_s0 + $0x4] sm:$0xf] }
   0x2   :  { %v66_v1 = vrot.slane %v3368_v0, 4 }
   0x3   :  { %17 = vsyncpa [#allocation3], 0  ;;  %s4415_s23 = smov 127   ;;  %s4416_s24 = smov 125   ;;  %v45_v2 = vld [vmem:[%s5249_s0] sm:$0xf] }
   0x4   :  { %67 = vrot.lane.b32.xlu0 %v66_v1, %s4415_s23  ;;  %73 = vrot.lane.b32.xlu1 %v66_v1, %s4416_s24  ;;  %s4417_s27 = smov 126   ;;  %s4418_s28 = smov 124   ;;  %v47_v3 = vrot.slane %v45_v2, 4  ;;  %v4419_v4 = vmov 0.0|0.0   ;;  %vm60_vm0 = vcmask 1043456   ;;  %vm4420_vm1 = vmmov 0  }
   0x5   :  { %3991 = vmatprep.subr.bf16.mxu0 %v4419_v4  ;;  %3994 = vmatprep.subr.bf16.mxu1 %v4419_v4  ;;  %v4421_v8 = vmov 0.0   ;;  %v180_v11 = vld [vmem:[%s5251_s2] sm:$0xff]  ;;  %v181_v12 = vld [vmem:[%s5251_s2 + $0x8] sm:$0xff]  ;;  %v182_v13 = vld [vmem:[%s5251_s2 + $0x10] sm:$0xff]  ;;  %s4422_s18 = smov 60   ;;  %vm91_vm2 = vcmask 490496  }
   0x6   :  { %3675 = vmatprep.mubr.msk.f32.mxu0 %vm4420_vm1, %v4421_v8  ;;  %3708 = vmatprep.mubr.msk.f32.mxu1 %vm4420_vm1, %v4421_v8  ;;  %v3995_v15 = vpack.c.bf16 %v181_v12, %v180_v11  ;;  %v183_v16 = vld [vmem:[%s5251_s2 + $0x18] sm:$0xff]  ;;  %v184_v19 = vld [vmem:[%s5251_s2 + $0x20] sm:$0xff]  ;;  %v185_v20 = vld [vmem:[%s5251_s2 + $0x28] sm:$0xff]  ;;  %vm100_vm3 = vcmask 1044480   ;;  %vm96_vm4 = vcmask 171008   ;;  %vm195_vm5 = vcmask 982016  }
   0x7   :  { %v3998_v17 = vpack.c.bf16 %v183_v16, %v182_v13  ;;  %v4001_v21 = vpack.c.bf16 %v185_v20, %v184_v19  ;;  %v42_v37 = vld [vmem:[%s5250_s1] sm:$0xff]  ;;  %v186_v38 = vld [vmem:[%s5251_s2 + $0x30] sm:$0xff]  ;;  %v187_v39 = vld [vmem:[%s5251_s2 + $0x38] sm:$0xff]  ;;  %s4423_s25 = smov 107   ;;  %vm310_vm7 = vcmask 64512   ;;  %vm423_vm8 = vcmask 60416  }
   0x8   :  { %70 = vrot.lane.b32.xlu0 %v3368_v0, %s4417_s27  ;;  %76 = vrot.lane.b32.xlu1 %v3368_v0, %s4418_s28  ;;  %v4004_v40 = vpack.c.bf16 %v187_v39, %v186_v38  ;;  %v188_v41 = vld [vmem:[%s5251_s2 + $0x40] sm:$0xff]  ;;  %v189_v42 = vld [vmem:[%s5251_s2 + $0x48] sm:$0xff]  ;;  %s4424_s13 = smov 120   ;;  %s4425_s14 = smov 112   ;;  %vm597_vm9 = vcmask 31744   ;;  %vm707_vm11 = vcmask 228352  }
   0x9   :  { %3996 = vmatpush3.bf16.msra.mxu1 %v3995_v15  ;;  %v4007_v43 = vpack.c.bf16 %v189_v42, %v188_v41  ;;  %v190_v44 = vld [vmem:[%s5251_s2 + $0x50] sm:$0xff]  ;;  %v191_v45 = vld [vmem:[%s5251_s2 + $0x58] sm:$0xff]  ;;  %v192_v47 = vld [vmem:[%s5251_s2 + $0x60] sm:$0xff]  ;;  %s4426_s15 = smov 116   ;;  %vm717_vm12 = vcmask 224256   ;;  %vm4427_vm13 = vmmov 1  }
   0xa   :  { %3997 = vmatprep.subr.bf16.mxu1 %v4419_v4  ;;  %v4010_v46 = vpack.c.bf16 %v191_v45, %v190_v44  ;;  %v193_v48 = vld [vmem:[%s5251_s2 + $0x68] sm:$0xff]  ;;  %v194_v50 = vld [vmem:[%s5251_s2 + $0x70] sm:$0xff]  ;;  %v3373_v1 = vld [vmem:[%s5260_s11] ss:$0 sm:$0xff]  ;;  %s4430_s2 = smov 88   ;;  %s4431_s26 = smov 80  }
   0xb   :  { %v4013_v49 = vpack.c.bf16 %v193_v48, %v192_v47  ;;  %vm4654_vm10 = vmpackc.low %vm597_vm9, %vm597_vm9  ;;  %s4433_s0 = smov 72   ;;  %s4434_s29 = smov 64   ;;  %vm1551_vm15 = vcmask 261120  }
   0xc   :  { %48 = vrot.lane.b32.xlu0 %v47_v3, %s4415_s23  ;;  %51 = vrot.lane.b32.xlu1 %v45_v2, %s4417_s27  ;;  %vm4738_vm14 = vmpackc.low %vm60_vm0, %vm4427_vm13  ;;  %s4432_s27 = smov 96   ;;  %s4435_s30 = smov 32  }
   0xd   :  { %3999 = vmatpush3.bf16.msra.mxu1 %v3998_v17 }
   0xe   :  { %4000 = vmatprep.subr.bf16.mxu1 %v4419_v4 }
  0x10   :  { %54 = vrot.lane.b32.xlu0 %v47_v3, %s4416_s24  ;;  %s4428_s24 = smov 108  }
  0x11   :  { %4002 = vmatpush3.bf16.msra.mxu1 %v4001_v21 }
  0x12   :  { %4003 = vmatprep.subr.bf16.mxu1 %v4419_v4 }
  0x14   :  { %57 = vrot.lane.b32.xlu0 %v45_v2, %s4418_s28 }
  0x15   :  { %4005 = vmatpush3.bf16.msra.mxu1 %v4004_v40 }
  0x16   :  { %4006 = vmatprep.subr.bf16.mxu1 %v4419_v4 }
  0x18   :  { %307 = vrot.lane.b32.xlu0 %v42_v37, %s4423_s25  ;;  %s4429_s25 = smov 104  }
  0x19   :  { %4008 = vmatpush3.bf16.msra.mxu1 %v4007_v43 }
  0x1a   :  { %4009 = vmatprep.subr.bf16.mxu1 %v4419_v4 }
  0x1d   :  { %4011 = vmatpush3.bf16.msra.mxu1 %v4010_v46 }
  0x1e   :  { %4012 = vmatprep.subr.bf16.mxu1 %v4419_v4 }
  0x21   :  { %4014 = vmatpush3.bf16.msra.mxu1 %v4013_v49 }
  0x22   :  { %3706 = vmatprep.subr.mxu1 %v4421_v8 }
  0x25   :  { %3707 = vmatpush3.msra.mxu1 %v194_v50 }
  0x76   :  { %v68_v5 = vpop.permute.xlu0 %67  ;;  %v74_v6 = vpop.permute.xlu1 %73 }
  0x77   :  { %v78_v9 = vsel %vm60_vm0, %v3368_v0, %v68_v5 }
  0x7a   :  { %v71_v7 = vpop.permute.xlu0 %70  ;;  %v77_v18 = vpop.permute.xlu1 %76 }
  0x7b   :  { %v79_v10 = vsel %vm60_vm0, %v71_v7, %v74_v6 }
  0x7c   :  { %v4182_v14 = vpack.i.bf16 %v79_v10, %v78_v9 }
  0x7e   :  { %4183 = vrot.lane.b32.xlu1 %v4182_v14, %s4422_s18  ;;  %v49_v22 = vpop.permute.xlu0 %48  ;;  %v52_v23 = vpop.permute.xlu1 %51 }
  0x7f   :  { %v61_v28 = vsel %vm60_vm0, %v45_v2, %v49_v22 }
  0x82   :  { %86 = vrot.lane.b32.xlu1 %v77_v18, %s4422_s18  ;;  %v55_v24 = vpop.permute.xlu0 %54 }
  0x83   :  { %v62_v29 = vsel %vm60_vm0, %v52_v23, %v55_v24 }
  0x86   :  { %v58_v30 = vpop.permute.xlu0 %57 }
  0x8a   :  { %v308_v58 = vpop.permute.xlu0 %307 }
  0xf0   :  { %v4184_v25 = vpop.permute.xlu1 %4183 }
  0xf1   :  { %v4186_v26 = vunpack.i.h.bf16 %v4184_v25  ;;  %v4185_v27 = vunpack.i.l.bf16 %v4184_v25 }
  0xf3   :  { %v92_v31 = vsel %vm91_vm2, %v61_v28, %v4185_v27  ;;  %v93_v32 = vsel %vm91_vm2, %v62_v29, %v4186_v26 }
  0xf4   :  { %v3992_v33 = vpack.c.bf16 %v93_v32, %v92_v31  ;;  %v87_v34 = vpop.permute.xlu1 %86 }
  0xf5   :  { %v94_v35 = vsel %vm91_vm2, %v58_v30, %v87_v34  ;;  %vm3101_vm2 = vcmask 916480  }
  0xf6   :  { %3993 = vmatpush3.bf16.msra.mxu0 %v3992_v33  ;;  %v95_v36 = vsel %vm60_vm0, %v94_v35, 1.0 }
  0xf7   :  { %3673 = vmatprep.subr.mxu0 %v4421_v8 }
  0xfa   :  { %3674 = vmatpush3.msk.msra.mxu0 %vm100_vm3, %v95_v36  ;;  %v4614_v36 = vld [vmem:[%s5253_s4] sm:$0xff]  ;;  %vm3192_vm3 = vcmask 523264  }
  0xfb   :  { %3676 = vmatmul.mubr.msk.f32.vlgmr.msra.gmra.mrb[0].mxu0 %vm96_vm4, %v42_v37  ;;  %3711 = vmatprep.subr.mxu0 %v308_v58  ;;  %v4619_v37 = vld [vmem:[%s5254_s5] ss:$0 sm:$0xff] }
  0xfc   :  { %3712 = vmatpush3.msra.mxu0 %v308_v58 }
  0xfd   :  { %3719 = vmatprep.subr.mxu0 %v4614_v36 }
 0x1ce   :  { %v170_v51 = vpop.f32.mrb[0].mxu0 }
 0x1cf   :  { %v175_v52 = vmin.f32 %v170_v51, 0.0  ;;  %v3677_v53 = vpop.f32.mrb[1].mxu0  ;;  %vm174_vm6 = vcmp.gt.f32.partialorder %v170_v51, 0.0 }
 0x1d1   :  { %v176_v54 = vmul.f32 1.442695, %v175_v52 }
 0x1d3   :  { %4267 = vpow2.f32 %v176_v54 }
 0x1dd   :  { %v4268_v55 = vpop.eup %4267 }
 0x1de   :  { %v3371_v56 = vadd.f32 -1.0, %v4268_v55 }
 0x1e0   :  { %v179_v57 = vsel %vm174_vm6, %v170_v51, %v3371_v56 }
 0x1e1   :  { %3709 = vmatmul.mubr.msk.f32.vlgmr.msra.gmra.mrb[0].mxu1 %vm195_vm5, %v179_v57  ;;  %vm3352_vm5 = vcmask 17408  }
 0x2b4   :  { %v265_v59 = vpop.f32.mrb[0].mxu1 }
 0x2b5   :  { %269 = vxpose.xlu1.b32.start.end [1/1] (short) (narrow) %v265_v59, 32  ;;  %v3710_v60 = vpop.f32.mrb[1].mxu1 }
 0x335   :  { %v285_v61 = vpop.trf.xlu1 }
 0x336   :  { %3713 = vmatprep.mubr.msk.f32.mxu0 %vm310_vm7, %v285_v61 }
 0x339   :  { %v286_v62 = vpop.trf.xlu1 }
 0x33a   :  { %3714 = vmatmul.mubr.msk.f32.vlgmr.msra.gmra.mrb[2].mxu0 %vm310_vm7, %v286_v62 }
 0x33b   :  { %3720 = vmatpush3.msra.mxu0 %v4614_v36 }
 0x33d   :  { %v287_v63 = vpop.trf.xlu1 }
 0x33e   :  { %3716 = vmatprep.mubr.msk.f32.mxu0 %vm310_vm7, %v287_v63 }
 0x341   :  { %v288_v0 = vpop.trf.xlu1 }
 0x342   :  { %3717 = vmatmul.mubr.msk.f32.gmra.mrb[4].mxu0 %vm310_vm7, %v288_v0 }
 0x40d   :  { %v3715_v2 = vpop.f32.mrb[2].mxu0 }
 0x40e   :  { %v389_v3 = vpop.f32.mrb[3].mxu0  ;;  %v4589_v6 = vadd.f32 %v3715_v2, %v3373_v1 }
 0x40f   :  { %v4587_v5 = vadd.f32 %v3373_v1, %v389_v3 }
 0x410   :  { %v417_v10 = vsel %vm310_vm7, %v4589_v6, 0.0 }
 0x411   :  { %v414_v7 = vsel %vm310_vm7, %v4587_v5, 0.0 }
 0x412   :  { %415 = vadd.xlane.f32.xlu0 %v414_v7 }
 0x415   :  { %v3718_v9 = vpop.f32.mrb[4].mxu0 }
 0x416   :  { %v4595_v11 = vadd.f32 %v3718_v9, %v3373_v1  ;;  %v399_v12 = vpop.f32.mrb[5].mxu0  ;;  %418 = vadd.xlane.f32.xlu0 %v417_v10 }
 0x417   :  { %v4597_v13 = vadd.f32 %v3373_v1, %v399_v12 }
 0x418   :  { %v424_v14 = vsel %vm423_vm8, %v4595_v11, 0.0 }
 0x419   :  { %425 = vadd.xlane.f32.xlu1 %v424_v14  ;;  %v420_v15 = vsel %vm310_vm7, %v4597_v13, 0.0 }
 0x41a   :  { %421 = vadd.xlane.f32.xlu0 %v420_v15 }
 0x49f   :  { %v416_v16 = vpop.xlane.xlu0 %415 }
 0x4a0   :  { %v428_v17 = vmul.f32 0.125, %v416_v16 }
 0x4a2   :  { %v432_v20 = vsub.f32 %v4587_v5, %v428_v17 }
 0x4a3   :  { %v419_v18 = vpop.xlane.xlu0 %418 }
 0x4a4   :  { %v429_v19 = vmul.f32 0.125, %v419_v18  ;;  %v436_v29 = vmul.f32 %v432_v20, %v432_v20 }
 0x4a6   :  { %v433_v21 = vsub.f32 %v4589_v6, %v429_v19  ;;  %v426_v22 = vpop.xlane.xlu1 %425  ;;  %v440_v31 = vsel %vm310_vm7, %v436_v29, 0.0 }
 0x4a7   :  { %v431_v23 = vmul.f32 0.125, %v426_v22  ;;  %v422_v24 = vpop.xlane.xlu0 %421 }
 0x4a8   :  { %v437_v25 = vmul.f32 %v433_v21, %v433_v21  ;;  %v430_v27 = vmul.f32 0.125, %v422_v24 }
 0x4a9   :  { %v435_v26 = vsub.f32 %v4595_v11, %v431_v23 }
 0x4aa   :  { %v443_v28 = vsel %vm310_vm7, %v437_v25, 0.0  ;;  %v434_v30 = vsub.f32 %v4597_v13, %v430_v27 }
 0x4ab   :  { %444 = vadd.xlane.f32.xlu0 %v443_v28  ;;  %v439_v32 = vmul.f32 %v435_v26, %v435_v26 }
 0x4ac   :  { %v438_v34 = vmul.f32 %v434_v30, %v434_v30 }
 0x4ad   :  { %v449_v33 = vsel %vm423_vm8, %v439_v32, 0.0 }
 0x4ae   :  { %v446_v35 = vsel %vm310_vm7, %v438_v34, 0.0 }
 0x4af   :  { %441 = vadd.xlane.f32.xlu0 %v440_v31 }
 0x4b3   :  { %450 = vadd.xlane.f32.xlu0 %v449_v33 }
 0x4b7   :  { %447 = vadd.xlane.f32.xlu0 %v446_v35 }
 0x4cd   :  { %478 = vrot.lane.b32.xlu0 %v4619_v37, %s4424_s13 }
 0x4d1   :  { %485 = vrot.lane.b32.xlu0 %v4619_v37, %s4425_s14 }
 0x538   :  { %v445_v38 = vpop.xlane.xlu0 %444 }
 0x539   :  { %v453_v39 = vmul.f32 0.125, %v445_v38 }
 0x53b   :  { %v457_v40 = vadd.f32 1e-05, %v453_v39 }
 0x53c   :  { %v442_v41 = vpop.xlane.xlu0 %441 }
 0x53d   :  { %4269 = vrsqrt.f32 %v457_v40  ;;  %v452_v42 = vmul.f32 0.125, %v442_v41 }
 0x53f   :  { %v456_v43 = vadd.f32 1e-05, %v452_v42 }
 0x540   :  { %v451_v44 = vpop.xlane.xlu0 %450 }
 0x541   :  { %4271 = vrsqrt.f32 %v456_v43  ;;  %v455_v45 = vmul.f32 0.125, %v451_v44  ;;  %v4684_v44 = vld [vmem:[%s5252_s3 + $0x8] sm:$0xff] }
 0x543   :  { %v459_v46 = vadd.f32 1e-05, %v455_v45 }
 0x544   :  { %v448_v47 = vpop.xlane.xlu0 %447 }
 0x545   :  { %4273 = vrsqrt.f32 %v459_v46  ;;  %v454_v48 = vmul.f32 0.125, %v448_v47  ;;  %v4689_v47 = vld [vmem:[%s5252_s3] sm:$0xff] }
 0x547   :  { %v4270_v49 = vpop.eup %4269  ;;  %v458_v50 = vadd.f32 1e-05, %v454_v48 }
 0x548   :  { %v465_v51 = vmul.f32 %v4270_v49, %v433_v21  ;;  %v479_v55 = vpop.permute.xlu0 %478 }
 0x549   :  { %4275 = vrsqrt.f32 %v458_v50 }
 0x54a   :  { %v475_v54 = vmul.f32 %v4619_v37, %v465_v51 }
 0x54b   :  { %v4272_v52 = vpop.eup %4271 }
 0x54c   :  { %v464_v53 = vmul.f32 %v4272_v52, %v432_v20  ;;  %v482_v59 = vadd.f32 %v479_v55, %v475_v54  ;;  %v486_v3 = vpop.permute.xlu0 %485  ;;  %v4696_v52 = vld [vmem:[%s5252_s3 + $0x18] sm:$0xf] }
 0x54e   :  { %v474_v56 = vmul.f32 %v4619_v37, %v464_v53 }
 0x54f   :  { %v4274_v57 = vpop.eup %4273 }
 0x550   :  { %v481_v58 = vadd.f32 %v479_v55, %v474_v56  ;;  %v467_v60 = vmul.f32 %v4274_v57, %v435_v26  ;;  %v4702_v56 = vld [vmem:[%s5252_s3 + $0x10] sm:$0xff] }
 0x552   :  { %3721 = vmatprep.mubr.msk.f32.mxu0 %vm310_vm7, %v481_v58  ;;  %v477_v63 = vmul.f32 %v4619_v37, %v467_v60 }
 0x553   :  { %v4276_v61 = vpop.eup %4275  ;;  %3722 = vmatmul.mubr.msk.f32.vlgmr.msra.gmra.mrb[6].mxu0 %vm310_vm7, %v482_v59 }
 0x554   :  { %v466_v62 = vmul.f32 %v4276_v61, %v434_v30  ;;  %v484_v2 = vadd.f32 %v479_v55, %v477_v63 }
 0x556   :  { %v476_v0 = vmul.f32 %v4619_v37, %v466_v62 }
 0x558   :  { %v483_v1 = vadd.f32 %v479_v55, %v476_v0 }
 0x55a   :  { %3724 = vmatprep.mubr.msk.f32.mxu0 %vm310_vm7, %v483_v1 }
 0x55b   :  { %3725 = vmatmul.mubr.msk.f32.gmra.mrb[8].mxu0 %vm310_vm7, %v484_v2 }
 0x626   :  { %v3723_v7 = vpop.f32.mrb[6].mxu0 }
 0x627   :  { %v572_v9 = vadd.f32 %v3723_v7, %v486_v3  ;;  %v566_v10 = vpop.f32.mrb[7].mxu0 }
 0x628   :  { %v567_v12 = vadd.f32 %v566_v10, %v486_v3 }
 0x62a   :  { %3735 = vmatprep.mubr.msk.f32.mxu0 %vm597_vm9, %v567_v12  ;;  %v4636_v14 = vpack.i.bf16 %v572_v9, %v567_v12 }
 0x62c   :  { %4198 = vrot.lane.b32.xlu1 %v4636_v14, %s4426_s15  ;;  %4188 = vrot.lane.b32.xlu0 %v4636_v14, %s4424_s13 }
 0x62e   :  { %v3726_v15 = vpop.f32.mrb[8].mxu0 }
 0x62f   :  { %v582_v16 = vadd.f32 %v3726_v15, %v486_v3  ;;  %v576_v17 = vpop.f32.mrb[9].mxu0 }
 0x630   :  { %v577_v18 = vadd.f32 %v576_v17, %v486_v3 }
 0x632   :  { %v4642_v19 = vpack.i.bf16 %v582_v16, %v577_v18 }
 0x634   :  { %4193 = vrot.lane.b32.xlu0 %v4642_v19, %s4424_s13 }
 0x638   :  { %4203 = vrot.lane.b32.xlu0 %v4642_v19, %s4426_s15 }
 0x63c   :  { %863 = vrot.lane.b32.xlu0 %v567_v12, %s4418_s28 }
 0x640   :  { %865 = vrot.lane.b32.xlu0 %v572_v9, %s4418_s28 }
 0x644   :  { %867 = vrot.lane.b32.xlu0 %v577_v18, %s4418_s28 }
 0x648   :  { %869 = vrot.lane.b32.xlu0 %v582_v16, %s4418_s28 }
 0x69e   :  { %v4189_v20 = vpop.permute.xlu0 %4188  ;;  %v4199_v25 = vpop.permute.xlu1 %4198 }
 0x69f   :  { %v4191_v21 = vunpack.i.h.bf16 %v4189_v20  ;;  %v4190_v22 = vunpack.i.l.bf16 %v4189_v20  ;;  %v4201_v27 = vunpack.i.h.bf16 %v4199_v25  ;;  %v4200_v28 = vunpack.i.l.bf16 %v4199_v25 }
 0x6a1   :  { %v4015_v24 = vpack.c.bf16 %v4191_v21, %v4190_v22  ;;  %v4037_v32 = vpack.c.bf16 %v4201_v27, %v4200_v28 }
 0x6a3   :  { %4017 = vmatprep.subr.msk.bf16.mxu0 %vm4654_vm10, %v4015_v24 }
 0x6a4   :  { %4020 = vmatpush3.bf16.xpose.msk.msra.mxu0 %vm4654_vm10, %v4015_v24 }
 0x6a6   :  { %v4194_v26 = vpop.permute.xlu0 %4193 }
 0x6a7   :  { %v4196_v29 = vunpack.i.h.bf16 %v4194_v26  ;;  %v4195_v30 = vunpack.i.l.bf16 %v4194_v26 }
 0x6a9   :  { %v4021_v31 = vpack.c.bf16 %v4196_v29, %v4195_v30 }
 0x6aa   :  { %v4204_v33 = vpop.permute.xlu0 %4203 }
 0x6ab   :  { %4023 = vmatprep.subr.msk.bf16.mxu0 %vm4654_vm10, %v4021_v31  ;;  %v4206_v34 = vunpack.i.h.bf16 %v4204_v33  ;;  %v4205_v35 = vunpack.i.l.bf16 %v4204_v33 }
 0x6ac   :  { %4026 = vmatpush3.bf16.xpose.msk.msra.mxu0 %vm4654_vm10, %v4021_v31 }
 0x6ad   :  { %4039 = vmatprep.subr.msk.bf16.mxu0 %vm4654_vm10, %v4037_v32  ;;  %v4043_v38 = vpack.c.bf16 %v4206_v34, %v4205_v35 }
 0x6ae   :  { %v864_v39 = vpop.permute.xlu0 %863 }
 0x6b2   :  { %v866_v40 = vpop.permute.xlu0 %865 }
 0x6b3   :  { %3736 = vmatmul.mubr.msk.f32.vlgmr.msra.gmra.mrb[10].mxu0 %vm597_vm9, %v572_v9 }
 0x6b4   :  { %3738 = vmatprep.mubr.msk.f32.mxu0 %vm597_vm9, %v577_v18  ;;  %4042 = vmatpush3.bf16.xpose.msk.msra.mxu0 %vm4654_vm10, %v4037_v32 }
 0x6b5   :  { %4045 = vmatprep.subr.msk.bf16.mxu0 %vm4654_vm10, %v4043_v38 }
 0x6b6   :  { %v868_v41 = vpop.permute.xlu0 %867 }
 0x6b7   :  { %3739 = vmatmul.mubr.msk.f32.gmra.mrb[12].mxu0 %vm597_vm9, %v582_v16 }
 0x6b8   :  { %3763 = vmatprep.mubr.msk.f32.mxu0 %vm597_vm9, %v864_v39 }
 0x6ba   :  { %v870_v42 = vpop.permute.xlu0 %869 }
 0x6bc   :  { %4048 = vmatpush3.bf16.xpose.msk.msra.mxu0 %vm4654_vm10, %v4043_v38 }
 0x6c3   :  { %3764 = vmatmul.mubr.msk.f32.vlgmr.msra.gmra.mrb[14].mxu0 %vm597_vm9, %v866_v40 }
 0x6c4   :  { %3766 = vmatprep.mubr.msk.f32.mxu0 %vm597_vm9, %v868_v41 }
 0x6c7   :  { %3767 = vmatmul.mubr.msk.f32.gmra.mrb[16].mxu0 %vm597_vm9, %v870_v42 }
 0x786   :  { %v3737_v43 = vpop.f32.mrb[10].mxu0 }
 0x787   :  { %v700_v45 = vmul.f32 0.35355338, %v3737_v43  ;;  %v680_v46 = vpop.f32.mrb[11].mxu0 }
 0x788   :  { %v699_v48 = vmul.f32 0.35355338, %v680_v46 }
 0x789   :  { %v704_v49 = vadd.f32 %v700_v45, %v4684_v44 }
 0x78a   :  { %v3740_v50 = vpop.f32.mrb[12].mxu0  ;;  %v703_v51 = vadd.f32 %v699_v48, %v4689_v47 }
 0x78b   :  { %v702_v53 = vmul.f32 0.35355338, %v3740_v50  ;;  %v690_v54 = vpop.f32.mrb[13].mxu0  ;;  %v711_v55 = vsel %vm707_vm11, %v704_v49, -inf }
 0x78c   :  { %v701_v57 = vmul.f32 0.35355338, %v690_v54  ;;  %712 = vmax.xlane.f32.xlu0 %v711_v55  ;;  %v708_v58 = vsel %vm707_vm11, %v703_v51, -inf }
 0x78d   :  { %709 = vmax.xlane.f32.xlu1 %v708_v58  ;;  %v706_v59 = vadd.f32 %v702_v53, %v4696_v52 }
 0x78e   :  { %v705_v60 = vadd.f32 %v701_v57, %v4702_v56 }
 0x78f   :  { %v718_v61 = vsel %vm717_vm12, %v706_v59, -inf }
 0x790   :  { %v714_v62 = vsel %vm707_vm11, %v705_v60, -inf }
 0x791   :  { %719 = vmax.xlane.f32.xlu1 %v718_v61  ;;  %715 = vmax.xlane.f32.xlu0 %v714_v62 }
 0x796   :  { %v3765_v63 = vpop.f32.mrb[14].mxu0 }
 0x797   :  { %v981_v0 = vmul.f32 0.35355338, %v3765_v63  ;;  %v961_v1 = vpop.f32.mrb[15].mxu0 }
 0x798   :  { %v980_v2 = vmul.f32 0.35355338, %v961_v1 }
 0x799   :  { %v985_v3 = vadd.f32 %v981_v0, %v4684_v44 }
 0x79a   :  { %v3768_v7 = vpop.f32.mrb[16].mxu0  ;;  %v984_v9 = vadd.f32 %v980_v2, %v4689_v47 }
 0x79b   :  { %v983_v10 = vmul.f32 0.35355338, %v3768_v7  ;;  %v971_v12 = vpop.f32.mrb[17].mxu0  ;;  %v991_v15 = vsel %vm707_vm11, %v985_v3, -inf }
 0x79c   :  { %v982_v16 = vmul.f32 0.35355338, %v971_v12  ;;  %992 = vmax.xlane.f32.xlu1 %v991_v15  ;;  %v988_v17 = vsel %vm707_vm11, %v984_v9, -inf }
 0x79d   :  { %989 = vmax.xlane.f32.xlu0 %v988_v17  ;;  %v987_v18 = vadd.f32 %v983_v10, %v4696_v52 }
 0x79e   :  { %v986_v20 = vadd.f32 %v982_v16, %v4702_v56 }
 0x79f   :  { %v997_v21 = vsel %vm717_vm12, %v987_v18, -inf }
 0x7a0   :  { %998 = vmax.xlane.f32.xlu1 %v997_v21  ;;  %v994_v22 = vsel %vm707_vm11, %v986_v20, -inf }
 0x7a1   :  { %995 = vmax.xlane.f32.xlu0 %v994_v22 }
 0x7b1   :  { %4213 = vrot.lane.b32.xlu1 %v4642_v19, %s4425_s14 }
 0x7b7   :  { %4208 = vrot.lane.b32.xlu0 %v4636_v14, %s4425_s14 }
 0x819   :  { %v713_v24 = vpop.xlane.xlu0 %712 }
 0x81a   :  { %v722_v25 = vsub.f32 %v704_v49, %v713_v24  ;;  %v710_v26 = vpop.xlane.xlu1 %709  ;;  %v1143_v24 = vrot.slane %v4614_v36, 4 }
 0x81b   :  { %v721_v27 = vsub.f32 %v703_v51, %v710_v26 }
 0x81c   :  { %v727_v28 = vmul.f32 1.442695, %v722_v25 }
 0x81d   :  { %v725_v29 = vmul.f32 1.442695, %v721_v27 }
 0x81e   :  { %4277 = vpow2.f32 %v727_v28  ;;  %v720_v30 = vpop.xlane.xlu1 %719  ;;  %v716_v31 = vpop.xlane.xlu0 %715 }
 0x81f   :  { %4279 = vpow2.f32 %v725_v29  ;;  %v724_v32 = vsub.f32 %v706_v59, %v720_v30  ;;  %v723_v33 = vsub.f32 %v705_v60, %v716_v31 }
 0x821   :  { %v731_v34 = vmul.f32 1.442695, %v724_v32  ;;  %v729_v35 = vmul.f32 1.442695, %v723_v33 }
 0x823   :  { %4281 = vpow2.f32 %v731_v34 }
 0x824   :  { %4283 = vpow2.f32 %v729_v35 }
 0x828   :  { %v4721_v38 = vpop.eup %4277 }
 0x829   :  { %v4723_v39 = vpop.eup %4279  ;;  %v993_v40 = vpop.xlane.xlu1 %992  ;;  %v736_v41 = vsel %vm707_vm11, %v4721_v38, 0.0 }
 0x82a   :  { %v1001_v42 = vsub.f32 %v985_v3, %v993_v40  ;;  %737 = vadd.xlane.f32.xlu1 %v736_v41  ;;  %v990_v43 = vpop.xlane.xlu0 %989  ;;  %v733_v45 = vsel %vm707_vm11, %v4723_v39, 0.0 }
 0x82b   :  { %v1000_v46 = vsub.f32 %v984_v9, %v990_v43  ;;  %734 = vadd.xlane.f32.xlu0 %v733_v45  ;;  %v3181_v9 = vld [vmem:[%s5258_s9] sm:$0xff] }
 0x82c   :  { %v1006_v48 = vmul.f32 1.442695, %v1001_v42 }
 0x82d   :  { %v4729_v49 = vpop.eup %4281  ;;  %v1004_v50 = vmul.f32 1.442695, %v1000_v46  ;;  %v999_v51 = vpop.xlane.xlu1 %998 }
 0x82e   :  { %v4731_v53 = vpop.eup %4283  ;;  %4285 = vpow2.f32 %v1006_v48  ;;  %v1003_v54 = vsub.f32 %v987_v18, %v999_v51  ;;  %v996_v55 = vpop.xlane.xlu0 %995  ;;  %v742_v57 = vsel %vm717_vm12, %v4729_v49, 0.0 }
 0x82f   :  { %4287 = vpow2.f32 %v1004_v50  ;;  %v1002_v58 = vsub.f32 %v986_v20, %v996_v55  ;;  %743 = vadd.xlane.f32.xlu1 %v742_v57  ;;  %v739_v59 = vsel %vm707_vm11, %v4731_v53, 0.0 }
 0x830   :  { %v1010_v60 = vmul.f32 1.442695, %v1003_v54  ;;  %740 = vadd.xlane.f32.xlu0 %v739_v59 }
 0x831   :  { %v1008_v61 = vmul.f32 1.442695, %v1002_v58  ;;  %v4214_v62 = vpop.permute.xlu1 %4213 }
 0x832   :  { %4289 = vpow2.f32 %v1010_v60  ;;  %v4216_v63 = vunpack.i.h.bf16 %v4214_v62  ;;  %v4209_v0 = vpop.permute.xlu0 %4208  ;;  %v4215_v1 = vunpack.i.l.bf16 %v4214_v62 }
 0x833   :  { %4291 = vpow2.f32 %v1008_v61  ;;  %v4211_v2 = vunpack.i.h.bf16 %v4209_v0  ;;  %v4210_v3 = vunpack.i.l.bf16 %v4209_v0 }
 0x834   :  { %v4031_v10 = vpack.c.bf16 %v4216_v63, %v4215_v1 }
 0x835   :  { %v4027_v7 = vpack.c.bf16 %v4211_v2, %v4210_v3 }
 0x837   :  { %4028 = vmatprep.subr.bf16.mxu1 %v4027_v7 }
 0x838   :  { %v4742_v12 = vpop.eup %4285  ;;  %4030 = vmatpush3.bf16.msra.mxu1 %v4027_v7 }
 0x839   :  { %v4288_v15 = vpop.eup %4287  ;;  %4033 = vmatprep.subr.msk.bf16.mxu1 %vm4738_vm14, %v4031_v10  ;;  %v1015_v16 = vsel %vm707_vm11, %v4742_v12, 0.0 }
 0x83a   :  { %1016 = vadd.xlane.f32.xlu1 %v1015_v16  ;;  %v1012_v17 = vsel %vm707_vm11, %v4288_v15, 0.0 }
 0x83b   :  { %1013 = vadd.xlane.f32.xlu0 %v1012_v17 }
 0x83c   :  { %v4749_v18 = vpop.eup %4289  ;;  %4036 = vmatpush3.bf16.msk.msra.mxu1 %vm4738_vm14, %v4031_v10 }
 0x83d   :  { %v4292_v20 = vpop.eup %4291  ;;  %v1021_v21 = vsel %vm717_vm12, %v4749_v18, 0.0 }
 0x83e   :  { %1022 = vadd.xlane.f32.xlu1 %v1021_v21  ;;  %v1018_v22 = vsel %vm707_vm11, %v4292_v20, 0.0 }
 0x83f   :  { %1019 = vadd.xlane.f32.xlu0 %v1018_v22 }
 0x84f   :  { %4218 = vrot.lane.b32.xlu1 %v4636_v14, %s4428_s24 }
 0x853   :  { %1144 = vrot.lane.b32.xlu1 %v1143_v24, %s4429_s25 }
 0x855   :  { %4223 = vrot.lane.b32.xlu0 %v4642_v19, %s4428_s24 }
 0x857   :  { %1350 = vrot.lane.b32.xlu1 %v4619_v37, %s4430_s2 }
 0x859   :  { %1245 = vrot.lane.b32.xlu0 %v4614_v36, %s4429_s25 }
 0x8b7   :  { %v738_v25 = vpop.xlane.xlu1 %737 }
 0x8b8   :  { %4293 = vrcp.f32 %v738_v25  ;;  %v735_v26 = vpop.xlane.xlu0 %734 }
 0x8b9   :  { %4295 = vrcp.f32 %v735_v26 }
 0x8bc   :  { %v744_v27 = vpop.xlane.xlu1 %743 }
 0x8bd   :  { %4297 = vrcp.f32 %v744_v27  ;;  %v741_v28 = vpop.xlane.xlu0 %740 }
 0x8be   :  { %4299 = vrcp.f32 %v741_v28 }
 0x8c2   :  { %v4294_v14 = vpop.eup %4293 }
 0x8c3   :  { %v4296_v29 = vpop.eup %4295  ;;  %v750_v30 = vmul.f32 %v4294_v14, %v4721_v38 }
 0x8c4   :  { %v749_v19 = vmul.f32 %v4296_v29, %v4723_v39 }
 0x8c6   :  { %3749 = vmatprep.mubr.msk.f32.mxu1 %vm707_vm11, %v749_v19 }
 0x8c7   :  { %v4298_v31 = vpop.eup %4297  ;;  %v1017_v32 = vpop.xlane.xlu1 %1016  ;;  %3750 = vmatmul.mubr.msk.f32.vlgmr.msra.gmra.mrb[2].mxu1 %vm707_vm11, %v750_v30 }
 0x8c8   :  { %v4300_v33 = vpop.eup %4299  ;;  %v1014_v34 = vpop.xlane.xlu0 %1013  ;;  %v752_v35 = vmul.f32 %v4298_v31, %v4729_v49 }
 0x8c9   :  { %4301 = vrcp.f32 %v1014_v34  ;;  %v751_v40 = vmul.f32 %v4300_v33, %v4731_v53 }
 0x8ca   :  { %4303 = vrcp.f32 %v1017_v32 }
 0x8cb   :  { %3752 = vmatprep.mubr.msk.f32.mxu1 %vm707_vm11, %v751_v40  ;;  %v1023_v41 = vpop.xlane.xlu1 %1022 }
 0x8cc   :  { %3753 = vmatmul.mubr.msk.f32.gmra.mrb[4].mxu1 %vm707_vm11, %v752_v35  ;;  %v1020_v39 = vpop.xlane.xlu0 %1019 }
 0x8cd   :  { %4305 = vrcp.f32 %v1020_v39 }
 0x8ce   :  { %4307 = vrcp.f32 %v1023_v41 }
 0x8cf   :  { %v4219_v38 = vpop.permute.xlu1 %4218 }
 0x8d0   :  { %v4221_v42 = vunpack.i.h.bf16 %v4219_v38  ;;  %v4220_v43 = vunpack.i.l.bf16 %v4219_v38  ;;  %v4224_v45 = vpop.permute.xlu0 %4223 }
 0x8d1   :  { %v4226_v46 = vunpack.i.h.bf16 %v4224_v45  ;;  %v4225_v48 = vunpack.i.l.bf16 %v4224_v45 }
 0x8d2   :  { %v4049_v50 = vpack.c.bf16 %v4221_v42, %v4220_v43 }
 0x8d3   :  { %v4302_v49 = vpop.eup %4301  ;;  %v4053_v51 = vpack.c.bf16 %v4226_v46, %v4225_v48  ;;  %v1145_v61 = vpop.permute.xlu1 %1144 }
 0x8d4   :  { %4050 = vmatprep.subr.bf16.mxu1 %v4049_v50  ;;  %v1028_v53 = vmul.f32 %v4302_v49, %v4288_v15  ;;  %v4304_v54 = vpop.eup %4303  ;;  %v1246_v62 = vpop.permute.xlu0 %1245 }
 0x8d5   :  { %4052 = vmatpush3.bf16.msra.mxu1 %v4049_v50  ;;  %v1029_v57 = vmul.f32 %v4304_v54, %v4742_v12 }
 0x8d6   :  { %4055 = vmatprep.subr.msk.bf16.mxu1 %vm4738_vm14, %v4053_v51  ;;  %3777 = vmatprep.mubr.msk.f32.mxu1 %vm707_vm11, %v1028_v53 }
 0x8d7   :  { %v4306_v55 = vpop.eup %4305  ;;  %v1351_v16 = vpop.permute.xlu1 %1350 }
 0x8d8   :  { %v4308_v58 = vpop.eup %4307  ;;  %v1030_v59 = vmul.f32 %v4306_v55, %v4292_v20 }
 0x8d9   :  { %4058 = vmatpush3.bf16.msk.msra.mxu1 %vm4738_vm14, %v4053_v51  ;;  %v1031_v60 = vmul.f32 %v4308_v58, %v4749_v18 }
 0x8da   :  { %3783 = vmatprep.subr.msk.mxu1 %vm60_vm0, %v1145_v61 }
 0x8dc   :  { %3778 = vmatmul.mubr.msk.f32.vlgmr.msra.gmra.mrb[6].mxu1 %vm707_vm11, %v1029_v57 }
 0x8dd   :  { %3780 = vmatprep.mubr.msk.f32.mxu1 %vm707_vm11, %v1030_v59  ;;  %3784 = vmatpush3.msk.msra.mxu1 %vm60_vm0, %v1145_v61 }
 0x8de   :  { %3791 = vmatprep.subr.msk.mxu1 %vm60_vm0, %v1246_v62 }
 0x8e0   :  { %3781 = vmatmul.mubr.msk.f32.gmra.mrb[8].mxu1 %vm707_vm11, %v1031_v60 }
 0x99a   :  { %v3751_v63 = vpop.f32.mrb[2].mxu1 }
 0x99b   :  { %v844_v0 = vpop.f32.mrb[3].mxu1 }
 0x99f   :  { %v3754_v1 = vpop.f32.mrb[4].mxu1 }
 0x9a0   :  { %v854_v2 = vpop.f32.mrb[5].mxu1 }
 0x9af   :  { %v3779_v3 = vpop.f32.mrb[6].mxu1 }
 0x9b0   :  { %v1123_v7 = vpop.f32.mrb[7].mxu1 }
 0x9b1   :  { %3785 = vmatprep.mubr.msk.f32.mxu1 %vm597_vm9, %v1123_v7 }
 0x9b2   :  { %3786 = vmatmul.mubr.msk.f32.vlgmr.msra.gmra.mrb[10].mxu1 %vm597_vm9, %v3779_v3 }
 0x9b3   :  { %3792 = vmatpush3.msk.msra.mxu1 %vm60_vm0, %v1246_v62  ;;  %v3782_v10 = vpop.f32.mrb[8].mxu1 }
 0x9b4   :  { %v1133_v12 = vpop.f32.mrb[9].mxu1 }
 0x9b5   :  { %3788 = vmatprep.mubr.msk.f32.mxu1 %vm597_vm9, %v1133_v12 }
 0x9b6   :  { %3789 = vmatmul.mubr.msk.f32.gmra.mrb[12].mxu1 %vm597_vm9, %v3782_v10 }
 0x9b7   :  { %3793 = vmatprep.mubr.msk.f32.mxu1 %vm597_vm9, %v844_v0 }
 0x9ba   :  { %3794 = vmatmul.mubr.msk.f32.vlgmr.msra.gmra.mrb[10].mxu1 %vm597_vm9, %v3751_v63 }
 0x9bb   :  { %3796 = vmatprep.mubr.msk.f32.mxu1 %vm597_vm9, %v854_v2 }
 0x9be   :  { %3797 = vmatmul.mubr.msk.f32.gmra.mrb[12].mxu1 %vm597_vm9, %v3754_v1 }
 0xa8d   :  { %v3795_v15 = vpop.f32.mrb[10].mxu1 }
 0xa8e   :  { %v1347_v17 = vadd.f32 %v3795_v15, %v4589_v6  ;;  %v1327_v18 = vpop.f32.mrb[11].mxu1 }
 0xa8f   :  { %v1346_v20 = vadd.f32 %v1327_v18, %v4587_v5 }
 0xa90   :  { %v4798_v21 = vadd.f32 %v1351_v16, %v1347_v17 }
 0xa91   :  { %v3798_v22 = vpop.f32.mrb[12].mxu1  ;;  %v4800_v24 = vadd.f32 %v1351_v16, %v1346_v20 }
 0xa92   :  { %v1337_v25 = vpop.f32.mrb[13].mxu1  ;;  %v1360_v26 = vsel %vm310_vm7, %v4798_v21, 0.0  ;;  %v1349_v27 = vadd.f32 %v3798_v22, %v4595_v11 }
 0xa93   :  { %v1348_v28 = vadd.f32 %v1337_v25, %v4597_v13  ;;  %1361 = vadd.xlane.f32.xlu1 %v1360_v26  ;;  %v1357_v6 = vsel %vm310_vm7, %v4800_v24, 0.0 }
 0xa94   :  { %1358 = vadd.xlane.f32.xlu0 %v1357_v6  ;;  %v4810_v5 = vadd.f32 %v1351_v16, %v1349_v27 }
 0xa95   :  { %v4808_v14 = vadd.f32 %v1351_v16, %v1348_v28 }
 0xa96   :  { %v1366_v19 = vsel %vm423_vm8, %v4810_v5, 0.0 }
 0xa97   :  { %v1363_v29 = vsel %vm310_vm7, %v4808_v14, 0.0 }
 0xa98   :  { %1364 = vadd.xlane.f32.xlu0 %v1363_v29 }
 0xa9c   :  { %1367 = vadd.xlane.f32.xlu0 %v1366_v19 }
 0xaa4   :  { %1409 = vrot.lane.b32.xlu1 %v4619_v37, %s4431_s26 }
 0xb20   :  { %v1362_v11 = vpop.xlane.xlu1 %1361 }
 0xb21   :  { %v1370_v13 = vmul.f32 0.125, %v1362_v11  ;;  %v1359_v30 = vpop.xlane.xlu0 %1358 }
 0xb22   :  { %v1369_v31 = vmul.f32 0.125, %v1359_v30 }
 0xb23   :  { %v1374_v32 = vsub.f32 %v4798_v21, %v1370_v13 }
 0xb24   :  { %v1373_v33 = vsub.f32 %v4800_v24, %v1369_v31  ;;  %v1410_v53 = vpop.permute.xlu1 %1409 }
 0xb25   :  { %v1365_v34 = vpop.xlane.xlu0 %1364  ;;  %v1378_v35 = vmul.f32 %v1374_v32, %v1374_v32 }
 0xb26   :  { %v1371_v40 = vmul.f32 0.125, %v1365_v34  ;;  %v1377_v41 = vmul.f32 %v1373_v33, %v1373_v33 }
 0xb27   :  { %v1384_v39 = vsel %vm310_vm7, %v1378_v35, 0.0 }
 0xb28   :  { %v1375_v38 = vsub.f32 %v4808_v14, %v1371_v40  ;;  %1385 = vadd.xlane.f32.xlu0 %v1384_v39  ;;  %v1381_v42 = vsel %vm310_vm7, %v1377_v41, 0.0 }
 0xb29   :  { %1382 = vadd.xlane.f32.xlu1 %v1381_v42  ;;  %v1368_v43 = vpop.xlane.xlu0 %1367 }
 0xb2a   :  { %v1372_v45 = vmul.f32 0.125, %v1368_v43  ;;  %v1379_v46 = vmul.f32 %v1375_v38, %v1375_v38 }
 0xb2c   :  { %v1376_v48 = vsub.f32 %v4810_v5, %v1372_v45  ;;  %v1387_v50 = vsel %vm310_vm7, %v1379_v46, 0.0 }
 0xb2d   :  { %1388 = vadd.xlane.f32.xlu1 %v1387_v50 }
 0xb2e   :  { %v1380_v49 = vmul.f32 %v1376_v48, %v1376_v48 }
 0xb30   :  { %v1390_v51 = vsel %vm423_vm8, %v1380_v49, 0.0 }
 0xb31   :  { %1391 = vadd.xlane.f32.xlu0 %v1390_v51 }
 0xb3e   :  { %1423 = vrot.lane.b32.xlu1 %v4614_v36, %s4432_s27 }
 0xb42   :  { %1426 = vrot.lane.b32.xlu1 %v4619_v37, %s4434_s29 }
 0xb46   :  { %1548 = vrot.lane.b32.xlu1 %v4619_v37, %s4435_s30 }
 0xb47   :  { %1416 = vrot.lane.b32.xlu0 %v4619_v37, %s4433_s0 }
 0xb4b   :  { %1546 = vrot.lane.b32.xlu0 %v4614_v36, %s4434_s29 }
 0xbb5   :  { %v1386_v54 = vpop.xlane.xlu0 %1385 }
 0xbb6   :  { %v1394_v55 = vmul.f32 0.125, %v1386_v54  ;;  %v1383_v57 = vpop.xlane.xlu1 %1382 }
 0xbb7   :  { %v1393_v58 = vmul.f32 0.125, %v1383_v57 }
 0xbb8   :  { %v1398_v59 = vadd.f32 1e-05, %v1394_v55 }
 0xbb9   :  { %v1397_v60 = vadd.f32 1e-05, %v1393_v58 }
 0xbba   :  { %4309 = vrsqrt.f32 %v1398_v59  ;;  %v1389_v61 = vpop.xlane.xlu1 %1388 }
 0xbbb   :  { %4311 = vrsqrt.f32 %v1397_v60  ;;  %v1395_v62 = vmul.f32 0.125, %v1389_v61 }
 0xbbd   :  { %v1399_v63 = vadd.f32 1e-05, %v1395_v62 }
 0xbbe   :  { %v1392_v0 = vpop.xlane.xlu0 %1391  ;;  %v1424_v1 = vpop.permute.xlu1 %1423 }
 0xbbf   :  { %4313 = vrsqrt.f32 %v1399_v63  ;;  %v1396_v2 = vmul.f32 0.125, %v1392_v0  ;;  %3799 = vmatprep.subr.mxu0 %v1424_v1 }
 0xbc0   :  { %3800 = vmatpush3.msra.mxu0 %v1424_v1 }
 0xbc1   :  { %v1400_v3 = vadd.f32 1e-05, %v1396_v2 }
 0xbc2   :  { %v1417_v16 = vpop.permute.xlu0 %1416  ;;  %v1427_v13 = vpop.permute.xlu1 %1426 }
 0xbc3   :  { %4315 = vrsqrt.f32 %v1400_v3 }
 0xbc4   :  { %v4310_v36 = vpop.eup %4309 }
 0xbc5   :  { %v4312_v7 = vpop.eup %4311  ;;  %v1406_v10 = vmul.f32 %v4310_v36, %v1374_v32 }
 0xbc6   :  { %v1405_v12 = vmul.f32 %v4312_v7, %v1373_v33  ;;  %v1547_v11 = vpop.permute.xlu0 %1546  ;;  %v1549_v63 = vpop.permute.xlu1 %1548 }
 0xbc7   :  { %v1413_v15 = vmul.f32 %v1410_v53, %v1406_v10  ;;  %3807 = vmatprep.subr.msk.mxu0 %vm1551_vm15, %v1547_v11 }
 0xbc8   :  { %v1412_v17 = vmul.f32 %v1410_v53, %v1405_v12 }
 0xbc9   :  { %v4314_v18 = vpop.eup %4313  ;;  %v1420_v25 = vadd.f32 %v1417_v16, %v1413_v15 }
 0xbca   :  { %v1407_v20 = vmul.f32 %v4314_v18, %v1375_v38  ;;  %v1419_v22 = vadd.f32 %v1417_v16, %v1412_v17 }
 0xbcc   :  { %v1414_v26 = vmul.f32 %v1410_v53, %v1407_v20  ;;  %3801 = vmatprep.mubr.msk.f32.mxu0 %vm310_vm7, %v1419_v22 }
 0xbcd   :  { %v4316_v27 = vpop.eup %4315  ;;  %3802 = vmatmul.mubr.msk.f32.vlgmr.msra.gmra.mrb[18].mxu0 %vm310_vm7, %v1420_v25 }
 0xbce   :  { %v1408_v28 = vmul.f32 %v4316_v27, %v1376_v48  ;;  %v1421_v6 = vadd.f32 %v1417_v16, %v1414_v26  ;;  %3808 = vmatpush3.xpose.msk.msra.mxu0 %vm1551_vm15, %v1547_v11 }
 0xbd0   :  { %v1415_v29 = vmul.f32 %v1410_v53, %v1408_v28  ;;  %3804 = vmatprep.mubr.msk.f32.mxu0 %vm310_vm7, %v1421_v6 }
 0xbd2   :  { %v1422_v19 = vadd.f32 %v1417_v16, %v1415_v29 }
 0xbd4   :  { %3805 = vmatmul.mubr.msk.f32.gmra.mrb[20].mxu0 %vm310_vm7, %v1422_v19 }
 0xca0   :  { %v3803_v30 = vpop.f32.mrb[18].mxu0 }
 0xca1   :  { %v1513_v31 = vadd.f32 %v3803_v30, %v1427_v13  ;;  %v1507_v32 = vpop.f32.mrb[19].mxu0 }
 0xca2   :  { %v1508_v33 = vadd.f32 %v1507_v32, %v1427_v13 }
 0xca3   :  { %v1531_v34 = vmul.f32 0.70710677, %v1513_v31  ;;  %v1527_v49 = vmul.f32 0.5, %v1513_v31 }
 0xca4   :  { %v1530_v35 = vmul.f32 0.70710677, %v1508_v33  ;;  %v1526_v48 = vmul.f32 0.5, %v1508_v33 }
 0xca5   :  { %4317 = verf.f32 %v1531_v34 }
 0xca6   :  { %4319 = verf.f32 %v1530_v35 }
 0xca7   :  { %v3806_v40 = vpop.f32.mrb[20].mxu0 }
 0xca8   :  { %v1523_v41 = vadd.f32 %v3806_v40, %v1427_v13  ;;  %v1517_v39 = vpop.f32.mrb[21].mxu0 }
 0xca9   :  { %v1518_v38 = vadd.f32 %v1517_v39, %v1427_v13 }
 0xcaa   :  { %v1533_v42 = vmul.f32 0.70710677, %v1523_v41  ;;  %v1529_v60 = vmul.f32 0.5, %v1523_v41 }
 0xcab   :  { %v1532_v43 = vmul.f32 0.70710677, %v1518_v38  ;;  %v1528_v58 = vmul.f32 0.5, %v1518_v38  ;;  %v4877_v38 = vld [vmem:[%s5254_s5 + $0x1] ss:$0 sm:$0xff] }
 0xcac   :  { %4321 = verf.f32 %v1533_v42  ;;  %v4884_v42 = vld [vmem:[%s5253_s4 + $0x8] sm:$0xff] }
 0xcad   :  { %4323 = verf.f32 %v1532_v43  ;;  %3815 = vmatprep.subr.mxu1 %v4884_v42 }
 0xcae   :  { %3816 = vmatpush3.msra.mxu1 %v4884_v42 }
 0xcaf   :  { %v4318_v45 = vpop.eup %4317 }
 0xcb0   :  { %v4320_v46 = vpop.eup %4319  ;;  %v1539_v37 = vadd.f32 1.0, %v4318_v45 }
 0xcb1   :  { %v1538_v50 = vadd.f32 1.0, %v4320_v46 }
 0xcb2   :  { %v1543_v53 = vmul.f32 %v1539_v37, %v1527_v49 }
 0xcb3   :  { %v1542_v51 = vmul.f32 %v1538_v50, %v1526_v48 }
 0xcb5   :  { %3809 = vmatprep.mubr.msk.f32.mxu0 %vm1551_vm15, %v1542_v51 }
 0xcb6   :  { %v4322_v54 = vpop.eup %4321  ;;  %3810 = vmatmul.mubr.msk.f32.vlgmr.msra.gmra.mrb[22].mxu0 %vm1551_vm15, %v1543_v53 }
 0xcb7   :  { %v4324_v55 = vpop.eup %4323  ;;  %v1541_v57 = vadd.f32 1.0, %v4322_v54 }
 0xcb8   :  { %v1540_v59 = vadd.f32 1.0, %v4324_v55 }
 0xcb9   :  { %v1545_v62 = vmul.f32 %v1541_v57, %v1529_v60 }
 0xcba   :  { %v1544_v61 = vmul.f32 %v1540_v59, %v1528_v58 }
 0xcbc   :  { %3812 = vmatprep.mubr.msk.f32.mxu0 %vm1551_vm15, %v1544_v61 }
 0xcbd   :  { %3813 = vmatmul.mubr.msk.f32.gmra.mrb[24].mxu0 %vm1551_vm15, %v1545_v62 }
 0xd89   :  { %v3811_v0 = vpop.f32.mrb[22].mxu0 }
 0xd8a   :  { %v1638_v1 = vadd.f32 %v3811_v0, %v1549_v63  ;;  %v1632_v2 = vpop.f32.mrb[23].mxu0 }
 0xd8b   :  { %v1633_v3 = vadd.f32 %v1632_v2, %v1549_v63 }
 0xd8c   :  { %v4847_v36 = vadd.f32 %v1638_v1, %v4798_v21 }
 0xd8d   :  { %v4850_v7 = vadd.f32 %v1633_v3, %v4800_v24 }
 0xd8e   :  { %v1662_v10 = vsel %vm310_vm7, %v4847_v36, 0.0 }
 0xd8f   :  { %1663 = vadd.xlane.f32.xlu1 %v1662_v10  ;;  %v1659_v12 = vsel %vm310_vm7, %v4850_v7, 0.0 }
 0xd90   :  { %v3814_v15 = vpop.f32.mrb[24].mxu0  ;;  %1660 = vadd.xlane.f32.xlu0 %v1659_v12 }
 0xd91   :  { %v1642_v16 = vpop.f32.mrb[25].mxu0  ;;  %v1648_v17 = vadd.f32 %v3814_v15, %v1549_v63 }
 0xd92   :  { %v1643_v18 = vadd.f32 %v1642_v16, %v1549_v63 }
 0xd93   :  { %v4860_v21 = vadd.f32 %v1648_v17, %v4810_v5 }
 0xd94   :  { %v4857_v20 = vadd.f32 %v1643_v18, %v4808_v14 }
 0xd95   :  { %v1668_v22 = vsel %vm423_vm8, %v4860_v21, 0.0 }
 0xd96   :  { %v1665_v24 = vsel %vm310_vm7, %v4857_v20, 0.0 }
 0xd97   :  { %1666 = vadd.xlane.f32.xlu0 %v1665_v24 }
 0xd9b   :  { %1669 = vadd.xlane.f32.xlu0 %v1668_v22 }
 0xe1c   :  { %v1664_v25 = vpop.xlane.xlu1 %1663 }
 0xe1d   :  { %v1672_v26 = vmul.f32 0.125, %v1664_v25  ;;  %v1661_v27 = vpop.xlane.xlu0 %1660 }
 0xe1e   :  { %v1671_v28 = vmul.f32 0.125, %v1661_v27 }
 0xe1f   :  { %v1676_v6 = vsub.f32 %v4847_v36, %v1672_v26 }
 0xe20   :  { %v1675_v14 = vsub.f32 %v4850_v7, %v1671_v28 }
 0xe21   :  { %v1680_v29 = vmul.f32 %v1676_v6, %v1676_v6 }
 0xe22   :  { %v1679_v19 = vmul.f32 %v1675_v14, %v1675_v14 }
 0xe23   :  { %v1686_v5 = vsel %vm310_vm7, %v1680_v29, 0.0 }
 0xe24   :  { %1687 = vadd.xlane.f32.xlu0 %v1686_v5  ;;  %v1667_v11 = vpop.xlane.xlu0 %1666  ;;  %v1683_v13 = vsel %vm310_vm7, %v1679_v19, 0.0 }
 0xe25   :  { %v1673_v30 = vmul.f32 0.125, %v1667_v11  ;;  %1684 = vadd.xlane.f32.xlu1 %v1683_v13 }
 0xe27   :  { %v1677_v31 = vsub.f32 %v4857_v20, %v1673_v30 }
 0xe28   :  { %v1670_v32 = vpop.xlane.xlu0 %1669 }
 0xe29   :  { %v1674_v33 = vmul.f32 0.125, %v1670_v32  ;;  %v1681_v34 = vmul.f32 %v1677_v31, %v1677_v31 }
 0xe2b   :  { %v1678_v35 = vsub.f32 %v4860_v21, %v1674_v33  ;;  %v1689_v40 = vsel %vm310_vm7, %v1681_v34, 0.0 }
 0xe2c   :  { %1690 = vadd.xlane.f32.xlu1 %v1689_v40 }
 0xe2d   :  { %v1682_v41 = vmul.f32 %v1678_v35, %v1678_v35 }
 0xe2f   :  { %v1692_v39 = vsel %vm423_vm8, %v1682_v41, 0.0 }
 0xe30   :  { %1693 = vadd.xlane.f32.xlu0 %v1692_v39 }
 0xe3d   :  { %1721 = vrot.lane.b32.xlu1 %v4877_v38, %s4424_s13 }
 0xe46   :  { %1728 = vrot.lane.b32.xlu0 %v4877_v38, %s4425_s14 }
 0xeb1   :  { %v1688_v43 = vpop.xlane.xlu0 %1687 }
 0xeb2   :  { %v1696_v45 = vmul.f32 0.125, %v1688_v43  ;;  %v1685_v46 = vpop.xlane.xlu1 %1684 }
 0xeb3   :  { %v1695_v37 = vmul.f32 0.125, %v1685_v46 }
 0xeb4   :  { %v1700_v48 = vadd.f32 1e-05, %v1696_v45 }
 0xeb5   :  { %v1699_v50 = vadd.f32 1e-05, %v1695_v37 }
 0xeb6   :  { %4325 = vrsqrt.f32 %v1700_v48 }
 0xeb7   :  { %4327 = vrsqrt.f32 %v1699_v50 }
 0xeb9   :  { %v1691_v49 = vpop.xlane.xlu1 %1690 }
 0xeba   :  { %v1697_v51 = vmul.f32 0.125, %v1691_v49 }
 0xebc   :  { %v1701_v53 = vadd.f32 1e-05, %v1697_v51 }
 0xebd   :  { %v1694_v54 = vpop.xlane.xlu0 %1693  ;;  %v1722_v62 = vpop.permute.xlu1 %1721 }
 0xebe   :  { %4329 = vrsqrt.f32 %v1701_v53  ;;  %v1698_v55 = vmul.f32 0.125, %v1694_v54 }
 0xec0   :  { %v4326_v57 = vpop.eup %4325  ;;  %v1702_v58 = vadd.f32 1e-05, %v1698_v55 }
 0xec1   :  { %v4328_v59 = vpop.eup %4327  ;;  %v1708_v60 = vmul.f32 %v4326_v57, %v1676_v6  ;;  %v1729_v22 = vpop.permute.xlu0 %1728 }
 0xec2   :  { %4331 = vrsqrt.f32 %v1702_v58  ;;  %v1707_v61 = vmul.f32 %v4328_v59, %v1675_v14 }
 0xec3   :  { %v1718_v63 = vmul.f32 %v4877_v38, %v1708_v60 }
 0xec4   :  { %v1717_v0 = vmul.f32 %v4877_v38, %v1707_v61 }
 0xec5   :  { %v1725_v2 = vadd.f32 %v1722_v62, %v1718_v63 }
 0xec6   :  { %v1724_v1 = vadd.f32 %v1722_v62, %v1717_v0 }
 0xec8   :  { %v4330_v3 = vpop.eup %4329  ;;  %3817 = vmatprep.mubr.msk.f32.mxu1 %vm310_vm7, %v1724_v1 }
 0xec9   :  { %v1709_v10 = vmul.f32 %v4330_v3, %v1677_v31  ;;  %3818 = vmatmul.mubr.msk.f32.vlgmr.msra.gmra.mrb[14].mxu1 %vm310_vm7, %v1725_v2 }
 0xecb   :  { %v1719_v12 = vmul.f32 %v4877_v38, %v1709_v10 }
 0xecc   :  { %v4332_v15 = vpop.eup %4331 }
 0xecd   :  { %v1710_v16 = vmul.f32 %v4332_v15, %v1678_v35  ;;  %v1726_v17 = vadd.f32 %v1722_v62, %v1719_v12 }
 0xecf   :  { %v1720_v18 = vmul.f32 %v4877_v38, %v1710_v16  ;;  %3820 = vmatprep.mubr.msk.f32.mxu1 %vm310_vm7, %v1726_v17 }
 0xed1   :  { %v1727_v24 = vadd.f32 %v1722_v62, %v1720_v18 }
 0xed3   :  { %3821 = vmatmul.mubr.msk.f32.gmra.mrb[16].mxu1 %vm310_vm7, %v1727_v24 }
 0xf9c   :  { %v3819_v25 = vpop.f32.mrb[14].mxu1 }
 0xf9d   :  { %v4898_v26 = vadd.f32 %v3819_v25, %v1729_v22  ;;  %v1809_v27 = vpop.f32.mrb[15].mxu1 }
 0xf9e   :  { %v4900_v28 = vadd.f32 %v1809_v27, %v1729_v22 }
 0xfa0   :  { %3831 = vmatprep.mubr.msk.f32.mxu0 %vm597_vm9, %v4900_v28  ;;  %v4906_v6 = vpack.i.bf16 %v4898_v26, %v4900_v28 }
 0xfa2   :  { %4228 = vrot.lane.b32.xlu1 %v4906_v6, %s4424_s13 }
 0xfa6   :  { %v3822_v14 = vpop.f32.mrb[16].mxu1 }
 0xfa7   :  { %v4910_v29 = vadd.f32 %v3822_v14, %v1729_v22  ;;  %v1819_v19 = vpop.f32.mrb[17].mxu1 }
 0xfa8   :  { %v4912_v5 = vadd.f32 %v1819_v19, %v1729_v22 }
 0xfaa   :  { %v4916_v11 = vpack.i.bf16 %v4910_v29, %v4912_v5 }
 0xfac   :  { %4233 = vrot.lane.b32.xlu1 %v4916_v11, %s4424_s13 }
0x1014   :  { %v4229_v13 = vpop.permute.xlu1 %4228 }
0x1015   :  { %v4231_v30 = vunpack.i.h.bf16 %v4229_v13  ;;  %v4230_v31 = vunpack.i.l.bf16 %v4229_v13 }
0x1017   :  { %v4059_v32 = vpack.c.bf16 %v4231_v30, %v4230_v31 }
0x1019   :  { %4061 = vmatprep.subr.msk.bf16.mxu0 %vm4654_vm10, %v4059_v32 }
0x101a   :  { %4064 = vmatpush3.bf16.xpose.msk.msra.mxu0 %vm4654_vm10, %v4059_v32 }
0x101e   :  { %v4234_v33 = vpop.permute.xlu1 %4233 }
0x101f   :  { %v4236_v34 = vunpack.i.h.bf16 %v4234_v33  ;;  %v4235_v35 = vunpack.i.l.bf16 %v4234_v33 }
0x1021   :  { %v4065_v40 = vpack.c.bf16 %v4236_v34, %v4235_v35 }
0x1023   :  { %4067 = vmatprep.subr.msk.bf16.mxu0 %vm4654_vm10, %v4065_v40 }
0x1024   :  { %4070 = vmatpush3.bf16.xpose.msk.msra.mxu0 %vm4654_vm10, %v4065_v40 }
0x102b   :  { %3832 = vmatmul.mubr.msk.f32.vlgmr.msra.gmra.mrb[26].mxu0 %vm597_vm9, %v4898_v26 }
0x102c   :  { %3834 = vmatprep.mubr.msk.f32.mxu0 %vm597_vm9, %v4912_v5 }
0x102f   :  { %3835 = vmatmul.mubr.msk.f32.gmra.mrb[28].mxu0 %vm597_vm9, %v4910_v29 }
0x10fe   :  { %v3833_v41 = vpop.f32.mrb[26].mxu0 }
0x10ff   :  { %v1942_v39 = vmul.f32 0.35355338, %v3833_v41  ;;  %v1922_v43 = vpop.f32.mrb[27].mxu0 }
0x1100   :  { %v1941_v45 = vmul.f32 0.35355338, %v1922_v43 }
0x1101   :  { %v1946_v46 = vadd.f32 %v1942_v39, %v4684_v44 }
0x1102   :  { %v3836_v37 = vpop.f32.mrb[28].mxu0  ;;  %v1945_v48 = vadd.f32 %v1941_v45, %v4689_v47 }
0x1103   :  { %v1932_v50 = vpop.f32.mrb[29].mxu0  ;;  %v1952_v49 = vsel %vm707_vm11, %v1946_v46, -inf  ;;  %v1944_v51 = vmul.f32 0.35355338, %v3836_v37 }
0x1104   :  { %v1943_v53 = vmul.f32 0.35355338, %v1932_v50  ;;  %1953 = vmax.xlane.f32.xlu1 %v1952_v49  ;;  %v1949_v54 = vsel %vm707_vm11, %v1945_v48, -inf }
0x1105   :  { %1950 = vmax.xlane.f32.xlu0 %v1949_v54  ;;  %v1948_v58 = vadd.f32 %v1944_v51, %v4696_v52 }
0x1106   :  { %v1947_v55 = vadd.f32 %v1943_v53, %v4702_v56 }
0x1107   :  { %v1958_v44 = vsel %vm717_vm12, %v1948_v58, -inf }
0x1108   :  { %v1955_v57 = vsel %vm707_vm11, %v1947_v55, -inf }
0x1109   :  { %1956 = vmax.xlane.f32.xlu0 %v1955_v57 }
0x110d   :  { %1959 = vmax.xlane.f32.xlu0 %v1958_v44 }
0x1115   :  { %4238 = vrot.lane.b32.xlu1 %v4906_v6, %s4425_s14 }
0x1119   :  { %4248 = vrot.lane.b32.xlu1 %v4906_v6, %s4426_s15 }
0x111d   :  { %4253 = vrot.lane.b32.xlu1 %v4916_v11, %s4426_s15 }
0x1191   :  { %v1954_v47 = vpop.xlane.xlu1 %1953 }
0x1192   :  { %v1962_v59 = vsub.f32 %v1946_v46, %v1954_v47  ;;  %v1951_v56 = vpop.xlane.xlu0 %1950 }
0x1193   :  { %v1961_v60 = vsub.f32 %v1945_v48, %v1951_v56 }
0x1194   :  { %v1967_v61 = vmul.f32 1.442695, %v1962_v59 }
0x1195   :  { %v1965_v62 = vmul.f32 1.442695, %v1961_v60  ;;  %v4239_v52 = vpop.permute.xlu1 %4238 }
0x1196   :  { %4333 = vpow2.f32 %v1967_v61  ;;  %v4241_v63 = vunpack.i.h.bf16 %v4239_v52  ;;  %v4240_v0 = vunpack.i.l.bf16 %v4239_v52  ;;  %v1957_v15 = vpop.xlane.xlu0 %1956 }
0x1197   :  { %4335 = vpow2.f32 %v1965_v62  ;;  %v1963_v18 = vsub.f32 %v1947_v55, %v1957_v15 }
0x1198   :  { %v4071_v1 = vpack.c.bf16 %v4241_v63, %v4240_v0  ;;  %v4385_v63 = vld [vmem:[%s5252_s3 + $0x8] sm:$0xff] }
0x1199   :  { %v1969_v22 = vmul.f32 1.442695, %v1963_v18  ;;  %v4387_v18 = vld [vmem:[%s5252_s3 + $0x10] sm:$0xff] }
0x119a   :  { %4072 = vmatprep.subr.bf16.mxu1 %v4071_v1  ;;  %v1960_v16 = vpop.xlane.xlu0 %1959 }
0x119b   :  { %4074 = vmatpush3.bf16.msra.mxu1 %v4071_v1  ;;  %v1964_v17 = vsub.f32 %v1948_v58, %v1960_v16  ;;  %v4386_v1 = vld [vmem:[%s5252_s3] sm:$0xff] }
0x119d   :  { %v1971_v24 = vmul.f32 1.442695, %v1964_v17 }
0x119f   :  { %4337 = vpow2.f32 %v1971_v24 }
0x11a0   :  { %v4334_v2 = vpop.eup %4333  ;;  %4339 = vpow2.f32 %v1969_v22  ;;  %v4388_v22 = vld [vmem:[%s5252_s3 + $0x18] sm:$0xf] }
0x11a1   :  { %v4336_v3 = vpop.eup %4335  ;;  %v1976_v10 = vsel %vm707_vm11, %v4334_v2, 0.0 }
0x11a2   :  { %1977 = vadd.xlane.f32.xlu0 %v1976_v10  ;;  %v1973_v12 = vsel %vm707_vm11, %v4336_v3, 0.0 }
0x11a3   :  { %1974 = vadd.xlane.f32.xlu1 %v1973_v12 }
0x11a9   :  { %v4338_v25 = vpop.eup %4337 }
0x11aa   :  { %v4340_v27 = vpop.eup %4339  ;;  %v1982_v14 = vsel %vm717_vm12, %v4338_v25, 0.0 }
0x11ab   :  { %v1979_v19 = vsel %vm707_vm11, %v4340_v27, 0.0 }
0x11b4   :  { %2105 = vrot.lane.b32.xlu1 %v4898_v26, %s4418_s28  ;;  %v4249_v26 = vpop.permute.xlu1 %4248 }
0x11b5   :  { %v4251_v33 = vunpack.i.h.bf16 %v4249_v26  ;;  %v4250_v34 = vunpack.i.l.bf16 %v4249_v26 }
0x11b7   :  { %v4081_v39 = vpack.c.bf16 %v4251_v33, %v4250_v34 }
0x11b8   :  { %4243 = vrot.lane.b32.xlu0 %v4916_v11, %s4425_s14  ;;  %v4254_v13 = vpop.permute.xlu1 %4253 }
0x11b9   :  { %v4256_v43 = vunpack.i.h.bf16 %v4254_v13  ;;  %v4255_v45 = vunpack.i.l.bf16 %v4254_v13 }
0x11bb   :  { %v4087_v37 = vpack.c.bf16 %v4256_v43, %v4255_v45 }
0x11d7   :  { %1983 = vadd.xlane.f32.xlu0 %v1982_v14 }
0x11d8   :  { %1980 = vadd.xlane.f32.xlu1 %v1979_v19 }
0x11e9   :  { %2109 = vrot.lane.b32.xlu1 %v4910_v29, %s4418_s28 }
0x11ed   :  { %2103 = vrot.lane.b32.xlu0 %v4900_v28, %s4418_s28 }
0x11f1   :  { %2107 = vrot.lane.b32.xlu0 %v4912_v5, %s4418_s28 }
0x122f   :  { %v1978_v30 = vpop.xlane.xlu0 %1977 }
0x1230   :  { %4341 = vrcp.f32 %v1978_v30  ;;  %v1975_v31 = vpop.xlane.xlu1 %1974 }
0x1231   :  { %4343 = vrcp.f32 %v1975_v31 }
0x1233   :  { %v4244_v32 = vpop.permute.xlu0 %4243 }
0x1234   :  { %v4246_v35 = vunpack.i.h.bf16 %v4244_v32  ;;  %v4245_v40 = vunpack.i.l.bf16 %v4244_v32  ;;  %v2106_v48 = vpop.permute.xlu1 %2105 }
0x1236   :  { %v4075_v41 = vpack.c.bf16 %v4246_v35, %v4245_v40 }
0x1238   :  { %4077 = vmatprep.subr.msk.bf16.mxu1 %vm4738_vm14, %v4075_v41 }
0x1239   :  { %4080 = vmatpush3.bf16.msk.msra.mxu1 %vm4738_vm14, %v4075_v41 }
0x123a   :  { %v4342_v28 = vpop.eup %4341  ;;  %4083 = vmatprep.subr.msk.bf16.mxu1 %vm4654_vm10, %v4081_v39 }
0x123b   :  { %v4344_v29 = vpop.eup %4343  ;;  %v1990_v46 = vmul.f32 %v4342_v28, %v4334_v2 }
0x123c   :  { %v1989_v5 = vmul.f32 %v4344_v29, %v4336_v3 }
0x123e   :  { %3845 = vmatprep.mubr.msk.f32.mxu1 %vm707_vm11, %v1989_v5 }
0x123f   :  { %3846 = vmatmul.mubr.msk.f32.vlgmr.msra.gmra.mrb[18].mxu1 %vm707_vm11, %v1990_v46 }
0x1242   :  { %4086 = vmatpush3.bf16.xpose.msk.msra.mxu1 %vm4654_vm10, %v4081_v39 }
0x1243   :  { %4089 = vmatprep.subr.msk.bf16.mxu1 %vm4654_vm10, %v4087_v37 }
0x124a   :  { %4092 = vmatpush3.bf16.xpose.msk.msra.mxu1 %vm4654_vm10, %v4087_v37 }
0x1264   :  { %v1984_v50 = vpop.xlane.xlu0 %1983 }
0x1265   :  { %4345 = vrcp.f32 %v1984_v50  ;;  %v1981_v49 = vpop.xlane.xlu1 %1980  ;;  %v2383_v50 = vrot.slane %v4884_v42, 4 }
0x1266   :  { %4347 = vrcp.f32 %v1981_v49 }
0x1268   :  { %v2104_v55 = vpop.permute.xlu0 %2103 }
0x1269   :  { %v2110_v23 = vpop.permute.xlu1 %2109 }
0x126c   :  { %v2108_v58 = vpop.permute.xlu0 %2107 }
0x126f   :  { %v4346_v51 = vpop.eup %4345 }
0x1270   :  { %v4348_v53 = vpop.eup %4347  ;;  %v1992_v57 = vmul.f32 %v4346_v51, %v4338_v25 }
0x1271   :  { %v1991_v54 = vmul.f32 %v4348_v53, %v4340_v27 }
0x1273   :  { %3848 = vmatprep.mubr.msk.f32.mxu1 %vm707_vm11, %v1991_v54 }
0x1274   :  { %3849 = vmatmul.mubr.msk.f32.gmra.mrb[20].mxu1 %vm707_vm11, %v1992_v57 }
0x1275   :  { %3859 = vmatprep.mubr.msk.f32.mxu1 %vm597_vm9, %v2104_v55 }
0x1278   :  { %3860 = vmatmul.mubr.msk.f32.vlgmr.msra.gmra.mrb[22].mxu1 %vm597_vm9, %v2106_v48 }
0x1279   :  { %3862 = vmatprep.mubr.msk.f32.mxu1 %vm597_vm9, %v2108_v58 }
0x127c   :  { %3863 = vmatmul.mubr.msk.f32.gmra.mrb[24].mxu1 %vm597_vm9, %v2110_v23 }
0x1312   :  { %v4982_v44 = vpop.f32.mrb[18].mxu1 }
0x1313   :  { %v4984_v47 = vpop.f32.mrb[19].mxu1 }
0x1347   :  { %v4986_v59 = vpop.f32.mrb[20].mxu1 }
0x1348   :  { %v4988_v56 = vpop.f32.mrb[21].mxu1 }
0x134b   :  { %v3861_v60 = vpop.f32.mrb[22].mxu1 }
0x134c   :  { %v2221_v61 = vmul.f32 0.35355338, %v3861_v60  ;;  %v2201_v62 = vpop.f32.mrb[23].mxu1 }
0x134d   :  { %v2220_v52 = vmul.f32 0.35355338, %v2201_v62 }
0x134e   :  { %v2225_v0 = vadd.f32 %v4385_v63, %v2221_v61 }
0x134f   :  { %v2224_v2 = vadd.f32 %v4386_v1, %v2220_v52  ;;  %v3864_v3 = vpop.f32.mrb[24].mxu1 }
0x1350   :  { %v2211_v10 = vpop.f32.mrb[25].mxu1  ;;  %v2231_v12 = vsel %vm707_vm11, %v2225_v0, -inf  ;;  %v2223_v15 = vmul.f32 0.35355338, %v3864_v3 }
0x1351   :  { %v2222_v16 = vmul.f32 0.35355338, %v2211_v10  ;;  %2232 = vmax.xlane.f32.xlu1 %v2231_v12  ;;  %v2228_v17 = vsel %vm707_vm11, %v2224_v2, -inf }
0x1352   :  { %2229 = vmax.xlane.f32.xlu0 %v2228_v17  ;;  %v2227_v25 = vadd.f32 %v4388_v22, %v2223_v15 }
0x1353   :  { %v2226_v24 = vadd.f32 %v4387_v18, %v2222_v16 }
0x1354   :  { %v2237_v14 = vsel %vm717_vm12, %v2227_v25, -inf }
0x1355   :  { %v2234_v27 = vsel %vm707_vm11, %v2226_v24, -inf }
0x1356   :  { %2235 = vmax.xlane.f32.xlu0 %v2234_v27 }
0x135a   :  { %2238 = vmax.xlane.f32.xlu0 %v2237_v14 }
0x13de   :  { %v2233_v19 = vpop.xlane.xlu1 %2232 }
0x13df   :  { %v2241_v26 = vsub.f32 %v2225_v0, %v2233_v19  ;;  %v2230_v13 = vpop.xlane.xlu0 %2229 }
0x13e0   :  { %v2240_v30 = vsub.f32 %v2224_v2, %v2230_v13 }
0x13e1   :  { %v2246_v31 = vmul.f32 1.442695, %v2241_v26 }
0x13e2   :  { %v2244_v32 = vmul.f32 1.442695, %v2240_v30 }
0x13e3   :  { %4349 = vpow2.f32 %v2246_v31  ;;  %v2236_v33 = vpop.xlane.xlu0 %2235 }
0x13e4   :  { %4351 = vpow2.f32 %v2244_v32  ;;  %v2242_v34 = vsub.f32 %v2226_v24, %v2236_v33 }
0x13e6   :  { %v2248_v35 = vmul.f32 1.442695, %v2242_v34 }
0x13e7   :  { %v2239_v40 = vpop.xlane.xlu0 %2238 }
0x13e8   :  { %4353 = vpow2.f32 %v2248_v35  ;;  %v2243_v41 = vsub.f32 %v2227_v25, %v2239_v40 }
0x13ea   :  { %v2250_v39 = vmul.f32 1.442695, %v2243_v41 }
0x13ec   :  { %4355 = vpow2.f32 %v2250_v39 }
0x13ed   :  { %v4350_v28 = vpop.eup %4349 }
0x13ee   :  { %v4352_v29 = vpop.eup %4351  ;;  %v2255_v5 = vsel %vm707_vm11, %v4350_v28, 0.0 }
0x13ef   :  { %2256 = vadd.xlane.f32.xlu0 %v2255_v5  ;;  %v2252_v43 = vsel %vm707_vm11, %v4352_v29, 0.0 }
0x13f0   :  { %2253 = vadd.xlane.f32.xlu1 %v2252_v43 }
0x13f2   :  { %v4354_v45 = vpop.eup %4353 }
0x13f3   :  { %v2258_v46 = vsel %vm707_vm11, %v4354_v45, 0.0 }
0x13f4   :  { %2259 = vadd.xlane.f32.xlu1 %v2258_v46 }
0x13f6   :  { %v4356_v37 = vpop.eup %4355 }
0x13f7   :  { %v2261_v48 = vsel %vm717_vm12, %v4356_v37, 0.0 }
0x13f8   :  { %2262 = vadd.xlane.f32.xlu0 %v2261_v48 }
0x1405   :  { %4258 = vrot.lane.b32.xlu1 %v4906_v6, %s4428_s24 }
0x1409   :  { %2384 = vrot.lane.b32.xlu1 %v2383_v50, %s4429_s25 }
0x140d   :  { %2485 = vrot.lane.b32.xlu1 %v4884_v42, %s4429_s25 }
0x140e   :  { %4263 = vrot.lane.b32.xlu0 %v4916_v11, %s4428_s24 }
0x1412   :  { %2590 = vrot.lane.b32.xlu0 %v4877_v38, %s4430_s2  ;;  %s4436_s2 = smov 99  }
0x147c   :  { %v2257_v51 = vpop.xlane.xlu0 %2256 }
0x147d   :  { %v2254_v49 = vpop.xlane.xlu1 %2253 }
0x147e   :  { %4357 = vrcp.f32 %v2254_v49 }
0x147f   :  { %4359 = vrcp.f32 %v2257_v51 }
0x1481   :  { %v2260_v53 = vpop.xlane.xlu1 %2259 }
0x1482   :  { %4361 = vrcp.f32 %v2260_v53 }
0x1485   :  { %v4259_v6 = vpop.permute.xlu1 %4258  ;;  %v2263_v54 = vpop.xlane.xlu0 %2262 }
0x1486   :  { %v4261_v55 = vunpack.i.h.bf16 %v4259_v6  ;;  %v4260_v11 = vunpack.i.l.bf16 %v4259_v6  ;;  %4363 = vrcp.f32 %v2263_v54 }
0x1488   :  { %v4358_v57 = vpop.eup %4357  ;;  %v4093_v58 = vpack.c.bf16 %v4261_v55, %v4260_v11 }
0x1489   :  { %v4264_v23 = vpop.permute.xlu0 %4263  ;;  %v2268_v60 = vmul.f32 %v4358_v57, %v4352_v29  ;;  %v4360_v63 = vpop.eup %4359 }
0x148a   :  { %v4266_v61 = vunpack.i.h.bf16 %v4264_v23  ;;  %v4265_v62 = vunpack.i.l.bf16 %v4264_v23  ;;  %4094 = vmatprep.subr.bf16.mxu0 %v4093_v58  ;;  %v2385_v0 = vpop.permute.xlu1 %2384  ;;  %v2269_v2 = vmul.f32 %v4360_v63, %v4350_v28 }
0x148b   :  { %4096 = vmatpush3.bf16.msra.mxu0 %v4093_v58  ;;  %3873 = vmatprep.mubr.msk.f32.mxu0 %vm707_vm11, %v2268_v60 }
0x148c   :  { %v4097_v52 = vpack.c.bf16 %v4266_v61, %v4265_v62  ;;  %v4362_v1 = vpop.eup %4361 }
0x148d   :  { %v2270_v10 = vmul.f32 %v4362_v1, %v4354_v45  ;;  %v2591_v25 = vpop.permute.xlu0 %2590 }
0x148e   :  { %4099 = vmatprep.subr.msk.bf16.mxu0 %vm4738_vm14, %v4097_v52  ;;  %v2486_v15 = vpop.permute.xlu1 %2485 }
0x148f   :  { %4102 = vmatpush3.bf16.msk.msra.mxu0 %vm4738_vm14, %v4097_v52 }
0x1490   :  { %3879 = vmatprep.subr.msk.mxu0 %vm60_vm0, %v2385_v0  ;;  %v4364_v3 = vpop.eup %4363 }
0x1491   :  { %v2271_v12 = vmul.f32 %v4364_v3, %v4356_v37 }
0x1492   :  { %3874 = vmatmul.mubr.msk.f32.vlgmr.msra.gmra.mrb[30].mxu0 %vm707_vm11, %v2269_v2 }
0x1493   :  { %3876 = vmatprep.mubr.msk.f32.mxu0 %vm707_vm11, %v2270_v10  ;;  %3880 = vmatpush3.msk.msra.mxu0 %vm60_vm0, %v2385_v0 }
0x1494   :  { %3887 = vmatprep.subr.msk.mxu0 %vm60_vm0, %v2486_v15 }
0x1496   :  { %3877 = vmatmul.mubr.msk.f32.gmra.mrb[32].mxu0 %vm707_vm11, %v2271_v12 }
0x1565   :  { %v3875_v16 = vpop.f32.mrb[30].mxu0 }
0x1566   :  { %v2363_v17 = vpop.f32.mrb[31].mxu0 }
0x1567   :  { %3881 = vmatprep.mubr.msk.f32.mxu0 %vm597_vm9, %v2363_v17 }
0x1568   :  { %3882 = vmatmul.mubr.msk.f32.vlgmr.msra.gmra.mrb[34].mxu0 %vm597_vm9, %v3875_v16 }
0x1569   :  { %3888 = vmatpush3.msk.msra.mxu0 %vm60_vm0, %v2486_v15  ;;  %v3878_v18 = vpop.f32.mrb[32].mxu0  ;;  %vm2899_vm0 = vcmask 809984  }
0x156a   :  { %v2373_v24 = vpop.f32.mrb[33].mxu0 }
0x156b   :  { %3884 = vmatprep.mubr.msk.f32.mxu0 %vm597_vm9, %v2373_v24 }
0x156c   :  { %3885 = vmatmul.mubr.msk.f32.gmra.mrb[36].mxu0 %vm597_vm9, %v3878_v18 }
0x156d   :  { %3889 = vmatprep.mubr.msk.f32.mxu0 %vm597_vm9, %v4984_v47 }
0x1570   :  { %3890 = vmatmul.mubr.msk.f32.vlgmr.msra.gmra.mrb[34].mxu0 %vm597_vm9, %v4982_v44 }
0x1571   :  { %3892 = vmatprep.mubr.msk.f32.mxu0 %vm597_vm9, %v4988_v56 }
0x1574   :  { %3893 = vmatmul.mubr.msk.f32.gmra.mrb[36].mxu0 %vm597_vm9, %v4986_v59 }
0x1643   :  { %v3891_v22 = vpop.f32.mrb[34].mxu0 }
0x1644   :  { %v2587_v27 = vadd.f32 %v3891_v22, %v4847_v36  ;;  %v2567_v14 = vpop.f32.mrb[35].mxu0 }
0x1645   :  { %v2586_v19 = vadd.f32 %v2567_v14, %v4850_v7 }
0x1646   :  { %v5046_v26 = vadd.f32 %v2591_v25, %v2587_v27 }
0x1647   :  { %v5048_v13 = vadd.f32 %v2591_v25, %v2586_v19  ;;  %v3894_v47 = vpop.f32.mrb[36].mxu0 }
0x1648   :  { %v2589_v44 = vadd.f32 %v3894_v47, %v4860_v21  ;;  %v2577_v30 = vpop.f32.mrb[37].mxu0  ;;  %v2600_v56 = vsel %vm310_vm7, %v5046_v26, 0.0 }
0x1649   :  { %v2588_v59 = vadd.f32 %v2577_v30, %v4857_v20  ;;  %2601 = vadd.xlane.f32.xlu0 %v2600_v56  ;;  %v2597_v36 = vsel %vm310_vm7, %v5048_v13, 0.0  ;;  %v43_v56 = vld [vmem:[%s5250_s1 + $0x8] sm:$0xff] }
0x164a   :  { %v5056_v31 = vadd.f32 %v2591_v25, %v2589_v44  ;;  %2598 = vadd.xlane.f32.xlu1 %v2597_v36  ;;  %v5100_v36 = vld [vmem:[%s5260_s11] ss:$0 sm:$0xff]  ;;  %s4437_s11 = smov 56  }
0x164b   :  { %v5058_v7 = vadd.f32 %v2591_v25, %v2588_v59  ;;  %v4389_v59 = vld [vmem:[%s5250_s1] sm:$0xff] }
0x164c   :  { %v2606_v32 = vsel %vm423_vm8, %v5056_v31, 0.0 }
0x164d   :  { %v2603_v21 = vsel %vm310_vm7, %v5058_v7, 0.0 }
0x164e   :  { %2607 = vadd.xlane.f32.xlu1 %v2606_v32  ;;  %2604 = vadd.xlane.f32.xlu0 %v2603_v21 }
0x16d6   :  { %v2602_v33 = vpop.xlane.xlu0 %2601 }
0x16d7   :  { %v2610_v34 = vmul.f32 0.125, %v2602_v33  ;;  %v2599_v20 = vpop.xlane.xlu1 %2598 }
0x16d8   :  { %v2609_v35 = vmul.f32 0.125, %v2599_v20 }
0x16d9   :  { %v2614_v40 = vsub.f32 %v5046_v26, %v2610_v34 }
0x16da   :  { %v2613_v41 = vsub.f32 %v5048_v13, %v2609_v35 }
0x16db   :  { %v2608_v39 = vpop.xlane.xlu1 %2607  ;;  %v2605_v28 = vpop.xlane.xlu0 %2604  ;;  %v2618_v29 = vmul.f32 %v2614_v40, %v2614_v40 }
0x16dc   :  { %v2612_v5 = vmul.f32 0.125, %v2608_v39  ;;  %v2611_v43 = vmul.f32 0.125, %v2605_v28  ;;  %v2617_v45 = vmul.f32 %v2613_v41, %v2613_v41 }
0x16dd   :  { %v2624_v46 = vsel %vm310_vm7, %v2618_v29, 0.0 }
0x16de   :  { %v2616_v37 = vsub.f32 %v5056_v31, %v2612_v5  ;;  %v2615_v48 = vsub.f32 %v5058_v7, %v2611_v43  ;;  %2625 = vadd.xlane.f32.xlu1 %v2624_v46  ;;  %v2621_v50 = vsel %vm310_vm7, %v2617_v45, 0.0 }
0x16df   :  { %2622 = vadd.xlane.f32.xlu0 %v2621_v50 }
0x16e0   :  { %v2620_v49 = vmul.f32 %v2616_v37, %v2616_v37  ;;  %v2619_v51 = vmul.f32 %v2615_v48, %v2615_v48 }
0x16e2   :  { %v2630_v53 = vsel %vm423_vm8, %v2620_v49, 0.0  ;;  %v2627_v6 = vsel %vm310_vm7, %v2619_v51, 0.0 }
0x16e3   :  { %2631 = vadd.xlane.f32.xlu1 %v2630_v53  ;;  %2628 = vadd.xlane.f32.xlu0 %v2627_v6 }
0x16f4   :  { %2656 = vrot.lane.b32.xlu1 %v4877_v38, %s4433_s0 }
0x16f8   :  { %2663 = vrot.lane.b32.xlu1 %v4884_v42, %s4432_s27 }
0x16f9   :  { %2649 = vrot.lane.b32.xlu0 %v4877_v38, %s4431_s26 }
0x16fc   :  { %2786 = vrot.lane.b32.xlu1 %v4884_v42, %s4434_s29 }
0x16fd   :  { %2666 = vrot.lane.b32.xlu0 %v4877_v38, %s4434_s29 }
0x1700   :  { %2895 = vrot.lane.b32.xlu1 %v4389_v59, %s4436_s2 }
0x1701   :  { %2788 = vrot.lane.b32.xlu0 %v4877_v38, %s4435_s30 }
0x1704   :  { %3098 = vrot.lane.b32.xlu1 %v5100_v36, %s4424_s13 }
0x1705   :  { %2897 = vrot.lane.b32.xlu0 %v43_v56, %s4436_s2  ;;  %v3093_v56 = vld [vmem:[%s5257_s8 + $0x48] sm:$0xff] }
0x1709   :  { %3189 = vrot.lane.b32.xlu0 %v5100_v36, %s4437_s11 }
0x176b   :  { %v2626_v54 = vpop.xlane.xlu1 %2625 }
0x176c   :  { %v2634_v55 = vmul.f32 0.125, %v2626_v54  ;;  %v2623_v11 = vpop.xlane.xlu0 %2622 }
0x176d   :  { %v2633_v57 = vmul.f32 0.125, %v2623_v11 }
0x176e   :  { %v2638_v58 = vadd.f32 1e-05, %v2634_v55 }
0x176f   :  { %v2637_v23 = vadd.f32 1e-05, %v2633_v57 }
0x1770   :  { %4365 = vrsqrt.f32 %v2638_v58  ;;  %v2632_v60 = vpop.xlane.xlu1 %2631  ;;  %v2629_v61 = vpop.xlane.xlu0 %2628 }
0x1771   :  { %4367 = vrsqrt.f32 %v2637_v23  ;;  %v2636_v62 = vmul.f32 0.125, %v2632_v60  ;;  %v2635_v52 = vmul.f32 0.125, %v2629_v61 }
0x1773   :  { %v2640_v63 = vadd.f32 1e-05, %v2636_v62  ;;  %v2639_v42 = vadd.f32 1e-05, %v2635_v52 }
0x1774   :  { %v2657_v0 = vpop.permute.xlu1 %2656  ;;  %v2650_v2 = vpop.permute.xlu0 %2649 }
0x1775   :  { %4369 = vrsqrt.f32 %v2640_v63 }
0x1776   :  { %4371 = vrsqrt.f32 %v2639_v42 }
0x1778   :  { %v2664_v1 = vpop.permute.xlu1 %2663  ;;  %v2667_v32 = vpop.permute.xlu0 %2666 }
0x1779   :  { %3895 = vmatprep.subr.mxu1 %v2664_v1 }
0x177a   :  { %v4366_v38 = vpop.eup %4365  ;;  %3896 = vmatpush3.msra.mxu1 %v2664_v1 }
0x177b   :  { %v4368_v3 = vpop.eup %4367  ;;  %v2646_v10 = vmul.f32 %v4366_v38, %v2614_v40 }
0x177c   :  { %v2645_v12 = vmul.f32 %v4368_v3, %v2613_v41  ;;  %v2787_v30 = vpop.permute.xlu1 %2786  ;;  %v2789_v43 = vpop.permute.xlu0 %2788 }
0x177d   :  { %v2653_v15 = vmul.f32 %v2650_v2, %v2646_v10  ;;  %3903 = vmatprep.subr.msk.mxu1 %vm1551_vm15, %v2787_v30 }
0x177e   :  { %v2652_v16 = vmul.f32 %v2650_v2, %v2645_v12 }
0x177f   :  { %v4370_v17 = vpop.eup %4369  ;;  %v2660_v27 = vadd.f32 %v2657_v0, %v2653_v15 }
0x1780   :  { %v4372_v18 = vpop.eup %4371  ;;  %v2648_v24 = vmul.f32 %v4370_v17, %v2616_v37  ;;  %v2659_v22 = vadd.f32 %v2657_v0, %v2652_v16  ;;  %v2896_v46 = vpop.permute.xlu1 %2895 }
0x1781   :  { %v2647_v25 = vmul.f32 %v4372_v18, %v2615_v48  ;;  %v2898_v37 = vpop.permute.xlu0 %2897 }
0x1782   :  { %v2655_v14 = vmul.f32 %v2650_v2, %v2648_v24  ;;  %3897 = vmatprep.mubr.msk.f32.mxu1 %vm310_vm7, %v2659_v22  ;;  %v2900_v50 = vsel %vm2899_vm0, %v2896_v46, %v2898_v37  ;;  %v3087_v24 = vld [vmem:[%s5257_s8 + $0x18] sm:$0xff]  ;;  %v3001_v46 = vld [vmem:[%s5255_s6 + $0x10] sm:$0xff] }
0x1783   :  { %v2654_v19 = vmul.f32 %v2650_v2, %v2647_v25  ;;  %3898 = vmatmul.mubr.msk.f32.vlgmr.msra.gmra.mrb[26].mxu1 %vm310_vm7, %v2660_v27  ;;  %3911 = vmatprep.subr.mxu0 %v2900_v50  ;;  %v3088_v25 = vld [vmem:[%s5257_s8 + $0x20] sm:$0xff]  ;;  %v3089_v27 = vld [vmem:[%s5257_s8 + $0x28] sm:$0xff] }
0x1784   :  { %v2662_v47 = vadd.f32 %v2657_v0, %v2655_v14  ;;  %3904 = vmatpush3.xpose.msk.msra.mxu1 %vm1551_vm15, %v2787_v30  ;;  %3912 = vmatpush3.msra.mxu0 %v2900_v50  ;;  %v4117_v14 = vpack.c.bf16 %v3089_v27, %v3088_v25  ;;  %v3092_v30 = vld [vmem:[%s5257_s8 + $0x40] sm:$0xff] }
0x1785   :  { %v2661_v44 = vadd.f32 %v2657_v0, %v2654_v19  ;;  %4103 = vmatprep.subr.bf16.mxu1 %v4419_v4  ;;  %4110 = vmatprep.subr.bf16.mxu0 %v4419_v4  ;;  %v3090_v19 = vld [vmem:[%s5257_s8 + $0x30] sm:$0xff]  ;;  %v4123_v59 = vpack.c.bf16 %v3093_v56, %v3092_v30 }
0x1787   :  { %3900 = vmatprep.mubr.msk.f32.mxu1 %vm310_vm7, %v2661_v44 }
0x1788   :  { %3901 = vmatmul.mubr.msk.f32.gmra.mrb[28].mxu1 %vm310_vm7, %v2662_v47  ;;  %v3091_v47 = vld [vmem:[%s5257_s8 + $0x38] sm:$0xff] }
0x1789   :  { %v4120_v44 = vpack.c.bf16 %v3091_v47, %v3090_v19 }
0x1856   :  { %v3899_v21 = vpop.f32.mrb[26].mxu1 }
0x1857   :  { %v2753_v33 = vadd.f32 %v3899_v21, %v2667_v32  ;;  %v2747_v34 = vpop.f32.mrb[27].mxu1  ;;  %v3095_v21 = vld [vmem:[%s5257_s8 + $0x58] sm:$0xff] }
0x1858   :  { %v2748_v20 = vadd.f32 %v2747_v34, %v2667_v32  ;;  %v3096_v34 = vld [vmem:[%s5257_s8 + $0x60] sm:$0xff] }
0x1859   :  { %v2771_v35 = vmul.f32 0.70710677, %v2753_v33  ;;  %v2767_v54 = vmul.f32 0.5, %v2753_v33 }
0x185a   :  { %v2770_v40 = vmul.f32 0.70710677, %v2748_v20  ;;  %v2766_v53 = vmul.f32 0.5, %v2748_v20  ;;  %v3097_v20 = vld [vmem:[%s5257_s8 + $0x68] sm:$0xff] }
0x185b   :  { %4373 = verf.f32 %v2771_v35  ;;  %v3902_v41 = vpop.f32.mrb[28].mxu1  ;;  %v4129_v35 = vpack.c.bf16 %v3097_v20, %v3096_v34 }
0x185c   :  { %4375 = verf.f32 %v2770_v40  ;;  %v2763_v39 = vadd.f32 %v3902_v41, %v2667_v32  ;;  %v2757_v28 = vpop.f32.mrb[29].mxu1  ;;  %v3000_v40 = vld [vmem:[%s5255_s6 + $0x8] sm:$0xff]  ;;  %v2999_v41 = vld [vmem:[%s5255_s6] sm:$0xff] }
0x185d   :  { %v2758_v29 = vadd.f32 %v2757_v28, %v2667_v32  ;;  %v3094_v32 = vld [vmem:[%s5257_s8 + $0x50] sm:$0xff] }
0x185e   :  { %v2773_v5 = vmul.f32 0.70710677, %v2763_v39  ;;  %v2769_v62 = vmul.f32 0.5, %v2763_v39  ;;  %v4126_v33 = vpack.c.bf16 %v3095_v21, %v3094_v32 }
0x185f   :  { %v2772_v45 = vmul.f32 0.70710677, %v2758_v29  ;;  %v2768_v60 = vmul.f32 0.5, %v2758_v29 }
0x1860   :  { %4377 = verf.f32 %v2773_v5 }
0x1861   :  { %4379 = verf.f32 %v2772_v45 }
0x1865   :  { %v4374_v48 = vpop.eup %4373 }
0x1866   :  { %v4376_v49 = vpop.eup %4375  ;;  %v2779_v51 = vadd.f32 1.0, %v4374_v48 }
0x1867   :  { %v2778_v6 = vadd.f32 1.0, %v4376_v49 }
0x1868   :  { %v2783_v57 = vmul.f32 %v2779_v51, %v2767_v54 }
0x1869   :  { %v2782_v55 = vmul.f32 %v2778_v6, %v2766_v53  ;;  %v3007_v53 = vld [vmem:[%s5256_s7] sm:$0x3] }
0x186a   :  { %v4378_v11 = vpop.eup %4377 }
0x186b   :  { %v4380_v58 = vpop.eup %4379  ;;  %v2781_v23 = vadd.f32 1.0, %v4378_v11  ;;  %3905 = vmatprep.mubr.msk.f32.mxu1 %vm1551_vm15, %v2782_v55  ;;  %v3182_v55 = vld [vmem:[%s5258_s9 + $0x8] sm:$0xff] }
0x186c   :  { %v2780_v61 = vadd.f32 1.0, %v4380_v58  ;;  %3906 = vmatmul.mubr.msk.f32.vlgmr.msra.gmra.mrb[30].mxu1 %vm1551_vm15, %v2783_v57  ;;  %v4132_v11 = vpack.c.bf16 %v3182_v55, %v3181_v9  ;;  %v3183_v57 = vld [vmem:[%s5258_s9 + $0x10] sm:$0xff]  ;;  %v3184_v58 = vld [vmem:[%s5258_s9 + $0x18] sm:$0xff] }
0x186d   :  { %v2785_v63 = vmul.f32 %v2781_v23, %v2769_v62  ;;  %v4135_v23 = vpack.c.bf16 %v3184_v58, %v3183_v57 }
0x186e   :  { %v2784_v52 = vmul.f32 %v2780_v61, %v2768_v60  ;;  %v3185_v60 = vld [vmem:[%s5258_s9 + $0x20] sm:$0xff]  ;;  %v3186_v61 = vld [vmem:[%s5258_s9 + $0x28] sm:$0xff] }
0x186f   :  { %v4138_v62 = vpack.c.bf16 %v3186_v61, %v3185_v60 }
0x1870   :  { %3908 = vmatprep.mubr.msk.f32.mxu1 %vm1551_vm15, %v2784_v52  ;;  %v3187_v52 = vld [vmem:[%s5258_s9 + $0x30] sm:$0xff] }
0x1871   :  { %3909 = vmatmul.mubr.msk.f32.gmra.mrb[32].mxu1 %vm1551_vm15, %v2785_v63  ;;  %v3188_v63 = vld [vmem:[%s5258_s9 + $0x38] sm:$0xff] }
0x1872   :  { %3927 = vmatprep.mubr.msk.f32.mxu1 %vm4420_vm1, %v4421_v8 }
0x193f   :  { %v3907_v42 = vpop.f32.mrb[30].mxu1 }
0x1940   :  { %v2877_v0 = vadd.f32 %v3907_v42, %v2789_v43  ;;  %v2871_v1 = vpop.f32.mrb[31].mxu1  ;;  %v4141_v42 = vpack.c.bf16 %v3188_v63, %v3187_v52 }
0x1941   :  { %v2872_v38 = vadd.f32 %v2871_v1, %v2789_v43 }
0x1942   :  { %v2891_v3 = vadd.f32 %v2877_v0, %v5046_v26  ;;  %v3084_v26 = vld [vmem:[%s5257_s8] sm:$0xff]  ;;  %v3099_v0 = vpop.permute.xlu1 %3098 }
0x1943   :  { %v2890_v2 = vadd.f32 %v2872_v38, %v5048_v13  ;;  %v3085_v13 = vld [vmem:[%s5257_s8 + $0x8] sm:$0xff] }
0x1944   :  { %v3910_v10 = vpop.f32.mrb[32].mxu1 }
0x1945   :  { %v2887_v12 = vadd.f32 %v3910_v10, %v2789_v43  ;;  %v2881_v15 = vpop.f32.mrb[33].mxu1  ;;  %3913 = vmatprep.mubr.msk.f32.mxu0 %vm310_vm7, %v2890_v2 }
0x1946   :  { %v2882_v16 = vadd.f32 %v2881_v15, %v2789_v43  ;;  %3914 = vmatmul.mubr.msk.f32.vlgmr.msra.gmra.mrb[38].mxu0 %vm310_vm7, %v2891_v3  ;;  %v3002_v43 = vld [vmem:[%s5255_s6 + $0x18] sm:$0xf] }
0x1947   :  { %v2893_v18 = vadd.f32 %v2887_v12, %v5056_v31  ;;  %v4111_v31 = vpack.c.bf16 %v3085_v13, %v3084_v26  ;;  %v3274_v13 = vld [vmem:[%s5259_s10 + $0x10] sm:$0xff] }
0x1948   :  { %v2892_v17 = vadd.f32 %v2882_v16, %v5058_v7  ;;  %v3086_v7 = vld [vmem:[%s5257_s8 + $0x10] sm:$0xff]  ;;  %s4438_s8 = smov 24  }
0x1949   :  { %4112 = vmatpush3.bf16.msra.mxu0 %v4111_v31  ;;  %v4114_v22 = vpack.c.bf16 %v3087_v24, %v3086_v7  ;;  %3276 = vrot.lane.b32.xlu1 %v5100_v36, %s4438_s8  ;;  %v3190_v31 = vpop.permute.xlu0 %3189 }
0x194a   :  { %3916 = vmatprep.mubr.msk.f32.mxu0 %vm310_vm7, %v2892_v17  ;;  %4113 = vmatprep.subr.bf16.mxu0 %v4419_v4  ;;  %v3272_v17 = vld [vmem:[%s5259_s10] sm:$0xff] }
0x194b   :  { %3917 = vmatmul.mubr.msk.f32.gmra.mrb[40].mxu0 %vm310_vm7, %v2893_v18  ;;  %v3273_v18 = vld [vmem:[%s5259_s10 + $0x8] sm:$0xff] }
0x194c   :  { %3958 = vmatprep.mubr.msk.f32.mxu0 %vm4420_vm1, %v4421_v8  ;;  %v4144_v26 = vpack.c.bf16 %v3273_v18, %v3272_v17 }
0x194d   :  { %4115 = vmatpush3.bf16.msra.mxu0 %v4114_v22 }
0x194e   :  { %4116 = vmatprep.subr.bf16.mxu0 %v4419_v4 }
0x1951   :  { %4118 = vmatpush3.bf16.msra.mxu0 %v4117_v14 }
0x1952   :  { %4119 = vmatprep.subr.bf16.mxu0 %v4419_v4 }
0x1955   :  { %4121 = vmatpush3.bf16.msra.mxu0 %v4120_v44 }
0x1956   :  { %4122 = vmatprep.subr.bf16.mxu0 %v4419_v4 }
0x1959   :  { %4124 = vmatpush3.bf16.msra.mxu0 %v4123_v59 }
0x195a   :  { %4125 = vmatprep.subr.bf16.mxu0 %v4419_v4 }
0x195d   :  { %4127 = vmatpush3.bf16.msra.mxu0 %v4126_v33 }
0x195e   :  { %4128 = vmatprep.subr.bf16.mxu0 %v4419_v4 }
0x1961   :  { %4130 = vmatpush3.bf16.msra.mxu0 %v4129_v35 }
0x19bb   :  { %v3277_v44 = vpop.permute.xlu1 %3276 }
0x1a19   :  { %v3915_v39 = vpop.f32.mrb[38].mxu0 }
0x1a1a   :  { %v3004_v28 = vmul.f32 %v3915_v39, %v3000_v40  ;;  %v2980_v29 = vpop.f32.mrb[39].mxu0 }
0x1a1b   :  { %v3003_v5 = vmul.f32 %v2999_v41, %v2980_v29 }
0x1a1d   :  { %v4104_v45 = vpack.c.bf16 %v3004_v28, %v3003_v5 }
0x1a1e   :  { %v3918_v37 = vpop.f32.mrb[40].mxu0 }
0x1a1f   :  { %v3006_v48 = vmul.f32 %v3918_v37, %v3002_v43  ;;  %v2990_v50 = vpop.f32.mrb[41].mxu0  ;;  %4105 = vmatpush3.bf16.msra.mxu1 %v4104_v45 }
0x1a20   :  { %v3005_v49 = vmul.f32 %v3001_v46, %v2990_v50  ;;  %4106 = vmatprep.subr.bf16.mxu1 %v4419_v4 }
0x1a22   :  { %v4107_v51 = vpack.c.bf16 %v3006_v48, %v3005_v49 }
0x1a24   :  { %4109 = vmatpush3.bf16.msk.msra.mxu1 %vm4738_vm14, %v4107_v51 }
0x1a25   :  { %4131 = vmatprep.subr.bf16.mxu1 %v4419_v4 }
0x1a27   :  { %3928 = vmatmul.mubr.msk.f32.vlgmr.msra.gmra.mrb[34].mxu1 %vm707_vm11, %v3007_v53 }
0x1a28   :  { %3977 = vmatprep.mubr.msk.f32.mxu1 %vm4420_vm1, %v4421_v8  ;;  %4133 = vmatpush3.bf16.msra.mxu1 %v4132_v11 }
0x1a29   :  { %4134 = vmatprep.subr.bf16.mxu1 %v4419_v4 }
0x1a2c   :  { %4136 = vmatpush3.bf16.msra.mxu1 %v4135_v23 }
0x1a2d   :  { %4137 = vmatprep.subr.bf16.mxu1 %v4419_v4 }
0x1a30   :  { %4139 = vmatpush3.bf16.msra.mxu1 %v4138_v62 }
0x1a31   :  { %4140 = vmatprep.subr.bf16.mxu1 %v4419_v4 }
0x1a34   :  { %4142 = vmatpush3.bf16.msra.mxu1 %v4141_v42 }
0x1a35   :  { %4143 = vmatprep.subr.bf16.mxu1 %v4419_v4 }
0x1afa   :  { %v3080_v6 = vpop.f32.mrb[34].mxu1 }
0x1afb   :  { %v3929_v54 = vpop.f32.mrb[35].mxu1  ;;  %3959 = vmatmul.mubr.msk.f32.vlgmr.msra.gmra.mrb[42].mxu0 %vm3101_vm2, %v3080_v6 }
0x1bce   :  { %v3171_v1 = vpop.f32.mrb[42].mxu0 }
0x1bcf   :  { %v3172_v38 = vadd.f32 %v3171_v1, %v3099_v0  ;;  %v3960_v2 = vpop.f32.mrb[43].mxu0 }
0x1bd1   :  { %v3176_v3 = vmin.f32 %v3172_v38, 0.0  ;;  %vm3175_vm4 = vcmp.gt.f32.partialorder %v3172_v38, 0.0 }
0x1bd3   :  { %v3177_v10 = vmul.f32 1.442695, %v3176_v3 }
0x1bd5   :  { %4381 = vpow2.f32 %v3177_v10 }
0x1bdf   :  { %v4382_v12 = vpop.eup %4381 }
0x1be0   :  { %v3487_v15 = vadd.f32 -1.0, %v4382_v12 }
0x1be2   :  { %v3180_v16 = vsel %vm3175_vm4, %v3172_v38, %v3487_v15 }
0x1be3   :  { %3978 = vmatmul.mubr.msk.f32.vlgmr.msra.gmra.mrb[36].mxu1 %vm3192_vm3, %v3180_v16 }
0x1be4   :  { %3988 = vmatprep.mubr.msk.f32.mxu1 %vm4420_vm1, %v4421_v8  ;;  %4145 = vmatpush3.bf16.msra.mxu1 %v4144_v26  ;;  %v3275_v8 = vld [vmem:[%s5259_s10 + $0x18] sm:$0xff]  ;;  %s4439_s10 = smov [#allocation2]  }
0x1be5   :  { %4146 = vmatprep.subr.bf16.mxu1 %v4419_v4  ;;  %v4147_v7 = vpack.c.bf16 %v3275_v8, %v3274_v13  ;;  %s3360_s19 = sshll.u32 %s4439_s10, 4  ;;  %s3361_s19 = int_to_ptr.vmem [resolvable:$true] %s3360_s19 }
0x1be6   :  { %s4391_s4 = scalar_lea.vmem %s3361_s19, 32  ;;  %p4396_p1 = scmp.lt.s32.totalorder %s3361_s19, %s3361_s19 }
0x1be7   :  { %p4392_p0 = scmp.ne.s32.totalorder %s3361_s19, %s4391_s4  ;;  %p4397_p2 = scmp.lt.s32.totalorder %s4391_s4, %s4391_s4 }
0x1be8   :  { %4148 = vmatpush3.bf16.msra.mxu1 %v4147_v7 }
0x1be9   :  { %p4398_p3 = por %p4397_p2, %p4396_p1 }
0x1beb   :  { %p4399_p4 = pnand %p4398_p3, %p4392_p0 }
0x1cb6   :  { %v3262_v24 = vpop.f32.mrb[36].mxu1 }
0x1cb7   :  { %v3263_v22 = vadd.f32 %v3262_v24, %v3190_v31  ;;  %v3979_v25 = vpop.f32.mrb[37].mxu1 }
0x1cb9   :  { %v3267_v27 = vmin.f32 %v3263_v22, 0.0  ;;  %vm3266_vm1 = vcmp.gt.f32.partialorder %v3263_v22, 0.0 }
0x1cbb   :  { %v3268_v14 = vmul.f32 1.442695, %v3267_v27 }
0x1cbd   :  { %4383 = vpow2.f32 %v3268_v14 }
0x1cc7   :  { %v4384_v4 = vpop.eup %4383 }
0x1cc8   :  { %v3489_v19 = vadd.f32 -1.0, %v4384_v4 }
0x1cca   :  { %v3271_v47 = vsel %vm3266_vm1, %v3263_v22, %v3489_v19 }
0x1ccb   :  { %3989 = vmatmul.mubr.msk.f32.vlgmr.msra.gmra.mrb[38].mxu1 %vm1551_vm15, %v3271_v47 }
0x1d9e   :  { %v3348_v30 = vpop.f32.mrb[38].mxu1 }
0x1d9f   :  { %v3349_v56 = vadd.f32 %v3348_v30, %v3277_v44  ;;  %v3990_v36 = vpop.f32.mrb[39].mxu1 }
0x1da1   :  { %3353 = vst.msk [vmem:[#allocation2] sm:$0x3] %vm3352_vm5, %v3349_v56 }
0x1da2   :  { %4402 = shalt.err (!%p4399_p4)
}
0x1da3   :  { %s4403_s28 = scalar_lea.hbm %s5261_s12, 32 }
0x1da4   :  { %p4404_p5 = scmp.ne.s32.totalorder %s5261_s12, %s4403_s28  ;;  %p4407_p6 = scmp.lt.u32.totalorder %s4403_s28, %s5261_s12 }
0x1da6   :  { %p4409_p7 = pnand %p4407_p6, %p4404_p5 }
0x1da8   :  { %4412 = shalt.err (!%p4409_p7)
}
0x1da9   :  { %3363 = dma.vmem_to_hbm [thread:$0]  %s3361_s19, 32, %s5261_s12, [#allocation3]  }
0x1daa   :  { %4413 = dma.done.wait [#allocation3], 32  }
0x1dab   :  { %4414 = vsyncadd [#allocation3], 4294967264 }
0x1dac   :  { %3367 = vsyncpa [#allocation3], 1 }

</bundles_post_ra>
